<compile_context>
chip_gen: v7x
topology: tpu7x:2x2x1
jax: 0.10.0
libtpu: 0.0.40
codegen_flags: <defaults>
</compile_context>

<pallas_src>
import jax
import jax.numpy as jnp
from jax.experimental import pallas as pl
from jax.experimental.pallas import tpu as pltpu


# ----------------------------------------------------------------------------
# helpers
# ----------------------------------------------------------------------------
def _round_up(x, m):
    return (x + m - 1) // m * m


def _choose_m_tile(m, max_tile=2048):
    """Row-tile for the matmul M dim.

    Guarantees tile % 16 == 0 (bf16 sublane packing), tile <= max_tile, and a
    grid of >= 2 steps whenever m >= 32 so ("parallel",) can shard across both
    TensorCores on v7x.  Returns (tile, padded_m).
    """
    tm = max(16, min(max_tile, _round_up((m + 1) // 2, 16)))
    mp = _round_up(m, tm)
    return tm, mp


_COMPILER_PARAMS = pltpu.CompilerParams(
    dimension_semantics=("parallel",),
    # Largest double-buffered working set below is ~12 MiB; 32 MiB leaves
    # comfortable headroom even on v7x's 64 MiB physical VMEM.
    vmem_limit_bytes=32 * 1024 * 1024,
)


# ----------------------------------------------------------------------------
# fused conv(valid) + bias + ReLU + 2x2 maxpool kernel
# ----------------------------------------------------------------------------
def _conv_relu_pool_kernel(p_ref, w_ref, b_ref, o_ref):
    """p_ref: (4, TM, K) bf16 pool-quadrant patch planes; w_ref: (K, Cout) bf16;
    b_ref: (1, Cout) f32; o_ref: (TM, Cout) bf16.

    o = relu(max_q(p[q] @ w) + b)  — one folded MXU matmul over all 4 quadrants,
    with bias/ReLU hoisted out of the quadrant max (valid: relu, +b monotone).
    """
    tm = o_ref.shape[0]
    k = p_ref.shape[2]
    p = p_ref[...].reshape(4 * tm, k)              # leading-dim collapse (layout-preserving)
    r = jnp.dot(p, w_ref[...], preferred_element_type=jnp.float32)   # (4*TM, Cout) f32
    m = jnp.maximum(jnp.maximum(r[0 * tm:1 * tm], r[1 * tm:2 * tm]),
                    jnp.maximum(r[2 * tm:3 * tm], r[3 * tm:4 * tm]))
    o_ref[...] = jnp.maximum(m + b_ref[...], 0.0).astype(o_ref.dtype)


def _im2col_pooled_quadrants(x, kh, kw):
    """x: (B, H, W, C) bf16 NHWC -> (4, B*Hp*Wp, kh*kw*C) bf16 patch planes.

    Plane q = di*2+dj holds the im2col patches of conv-output positions
    (2*hp+di, 2*wp+dj), i.e. the 4 members of each 2x2 maxpool window.  Built
    directly in this layout via strided slices of x (single XLA fusion — no
    separate transpose or cast passes).  K flattened in (kh, kw, C) order to
    match the pre-permuted weights.
    """
    B, H, W, C = x.shape
    Ho, Wo = H - kh + 1, W - kw + 1
    assert Ho % 2 == 0 and Wo % 2 == 0, "2x2 maxpool expects even conv output"
    Hp, Wp = Ho // 2, Wo // 2
    planes = []
    for di in range(2):
        for dj in range(2):
            taps = []
            for i in range(kh):
                for j in range(kw):
                    taps.append(
                        x[:, di + i:di + i + 2 * Hp:2, dj + j:dj + j + 2 * Wp:2, :])
            q = jnp.stack(taps, axis=3).reshape(B, Hp, Wp, kh * kw * C)
            planes.append(q.reshape(B * Hp * Wp, kh * kw * C))
    return jnp.stack(planes, axis=0), B, Hp, Wp


def conv_relu_pool(x, w2d, b2d, kh, kw):
    """x: (B, H, W, Cin) bf16 NHWC; w2d: (kh*kw*Cin, Cout) bf16; b2d: (1, Cout) f32.

    Returns pooled NHWC activation (B, Hp, Wp, Cout) bf16.
    """
    K, Cout = w2d.shape
    p, B, Hp, Wp = _im2col_pooled_quadrants(x, kh, kw)        # (4, M, K) bf16
    M = B * Hp * Wp
    TM, Mp = _choose_m_tile(M)
    if Mp != M:
        p = jnp.pad(p, ((0, 0), (0, Mp - M), (0, 0)))

    flops = 2 * 4 * Mp * K * Cout
    bytes_accessed = 4 * Mp * K * 2 + K * Cout * 2 + Cout * 4 + Mp * Cout * 2

    out = pl.pallas_call(
        _conv_relu_pool_kernel,
        out_shape=jax.ShapeDtypeStruct((Mp, Cout), jnp.bfloat16),
        grid_spec=pltpu.PrefetchScalarGridSpec(
            num_scalar_prefetch=0,
            grid=(Mp // TM,),
            in_specs=[
                pl.BlockSpec((4, TM, K), lambda m: (0, m, 0)),
                pl.BlockSpec((K, Cout), lambda m: (0, 0)),
                pl.BlockSpec((1, Cout), lambda m: (0, 0)),
            ],
            out_specs=pl.BlockSpec((TM, Cout), lambda m: (m, 0)),
        ),
        compiler_params=_COMPILER_PARAMS,
        cost_estimate=pl.CostEstimate(flops=int(flops), transcendentals=0,
                                      bytes_accessed=int(bytes_accessed)),
    )(p, w2d, b2d)
    # NOTE: output keeps Cout (16/32) in the lane dim; the fully lane-dense
    # (rows, Wp*Cout) out_spec suggested in review needs an in-kernel
    # sublane->lane relayout reshape and is intentionally left out for
    # lowering safety at these tiny widths.
    return out[:M].reshape(B, Hp, Wp, Cout)


# ----------------------------------------------------------------------------
# fused fc1 + fc2 kernel (hidden stays in VMEM; no ReLU between, per model)
# ----------------------------------------------------------------------------
def _fc_fused_kernel(x_ref, w1_ref, b1_ref, w2_ref, b2_ref, o_ref):
    h = jnp.dot(x_ref[...], w1_ref[...], preferred_element_type=jnp.float32)
    h = h + b1_ref[...]
    logits = jnp.dot(h.astype(w2_ref.dtype), w2_ref[...],
                     preferred_element_type=jnp.float32) + b2_ref[...]
    o_ref[...] = logits.astype(o_ref.dtype)


def fc_fused(x, w1, b1, w2, b2, n_out):
    """x: (B, K1) bf16; w1: (K1, H) bf16; w2: (H, Np) bf16 (Np lane-padded to 128);
    biases f32 (1, .).  Returns (B, n_out) f32 logits."""
    B, K1 = x.shape
    H = w1.shape[1]
    Np = w2.shape[1]
    TB, Bp = _choose_m_tile(B)
    if Bp != B:
        x = jnp.pad(x, ((0, Bp - B), (0, 0)))

    flops = 2 * Bp * (K1 * H + H * Np)
    bytes_accessed = (Bp * K1 * 2 + K1 * H * 2 + H * Np * 2
                      + (H + Np) * 4 + Bp * Np * 4)

    out = pl.pallas_call(
        _fc_fused_kernel,
        out_shape=jax.ShapeDtypeStruct((Bp, Np), jnp.float32),
        grid_spec=pltpu.PrefetchScalarGridSpec(
            num_scalar_prefetch=0,
            grid=(Bp // TB,),
            in_specs=[
                pl.BlockSpec((TB, K1), lambda m: (m, 0)),
                pl.BlockSpec((K1, H), lambda m: (0, 0)),
                pl.BlockSpec((1, H), lambda m: (0, 0)),
                pl.BlockSpec((H, Np), lambda m: (0, 0)),
                pl.BlockSpec((1, Np), lambda m: (0, 0)),
            ],
            out_specs=pl.BlockSpec((TB, Np), lambda m: (m, 0)),
        ),
        compiler_params=_COMPILER_PARAMS,
        cost_estimate=pl.CostEstimate(flops=int(flops), transcendentals=0,
                                      bytes_accessed=int(bytes_accessed)),
    )(x, w1, b1, w2, b2)
    return out[:B, :n_out]


# ----------------------------------------------------------------------------
# parameters: torch-shaped init + one-time kernel-friendly re-layout
# ----------------------------------------------------------------------------
def init_params(key):
    ks = jax.random.split(key, 8)
    scale = 0.1
    return {
        "c1_w": scale * jax.random.normal(ks[0], (16, 1, 5, 5), jnp.float32),
        "c1_b": scale * jax.random.normal(ks[1], (16,), jnp.float32),
        "c2_w": scale * jax.random.normal(ks[2], (32, 16, 3, 3), jnp.float32),
        "c2_b": scale * jax.random.normal(ks[3], (32,), jnp.float32),
        "fc1_w": scale * jax.random.normal(ks[4], (256, 32 * 5 * 5), jnp.float32),
        "fc1_b": scale * jax.random.normal(ks[5], (256,), jnp.float32),
        "fc2_w": scale * jax.random.normal(ks[6], (10, 256), jnp.float32),
        "fc2_b": scale * jax.random.normal(ks[7], (10,), jnp.float32),
    }


def prepare_params(params):
    """One-time weight re-layout (hoisted out of the traced forward).

    * Conv weights -> (kh*kw*Cin, Cout) bf16 matching the (kh, kw, C) patch
      flatten order.
    * fc1 weight permuted from torch's (C, H, W) flatten order to the NHWC
      (H, W, C) flatten order used here; bf16.
    * fc2 weight/bias zero-padded from N=10 to N=128 for a lane-dense
      (unmasked-store) kernel output; logits sliced back to 10 outside.
    * Biases kept f32, shaped (1, N).
    """
    def conv_w(w):  # (Cout, Cin, kh, kw) -> (kh*kw*Cin, Cout)
        Cout, Cin, kh, kw = w.shape
        return w.transpose(2, 3, 1, 0).reshape(kh * kw * Cin, Cout).astype(jnp.bfloat16)

    fc1 = params["fc1_w"].reshape(256, 32, 5, 5)            # (out, C, H, W)
    fc1 = fc1.transpose(0, 2, 3, 1).reshape(256, 800).T      # -> ((H,W,C), out)

    fc2_w = params["fc2_w"].T                                # (256, 10)
    fc2_w = jnp.pad(fc2_w, ((0, 0), (0, 128 - fc2_w.shape[1])))
    fc2_b = jnp.pad(params["fc2_b"].reshape(1, -1), ((0, 0), (0, 128 - 10)))

    return {
        "c1_w": conv_w(params["c1_w"]),
        "c1_b": params["c1_b"].reshape(1, -1).astype(jnp.float32),
        "c2_w": conv_w(params["c2_w"]),
        "c2_b": params["c2_b"].reshape(1, -1).astype(jnp.float32),
        "fc1_w": fc1.astype(jnp.bfloat16),
        "fc1_b": params["fc1_b"].reshape(1, -1).astype(jnp.float32),
        "fc2_w": fc2_w.astype(jnp.bfloat16),
        "fc2_b": fc2_b.astype(jnp.float32),
    }


# ----------------------------------------------------------------------------
# forward
# ----------------------------------------------------------------------------
def cnn_forward(prepped, x):
    """x: (B, 1, 28, 28) NCHW float32 -> logits (B, 10) float32."""
    x = x.transpose(0, 2, 3, 1).astype(jnp.bfloat16)          # NHWC + bf16, once
    # conv1(5x5) + ReLU + maxpool2x2 : (B, 12, 12, 16) bf16
    y = conv_relu_pool(x, prepped["c1_w"], prepped["c1_b"], kh=5, kw=5)
    # dropout1: identity at inference
    # conv2(3x3) + ReLU + maxpool2x2 : (B, 5, 5, 32) bf16
    y = conv_relu_pool(y, prepped["c2_w"], prepped["c2_b"], kh=3, kw=3)
    # dropout2: identity at inference
    B = y.shape[0]
    flat = y.reshape(B, -1)             # (B, 800) bf16, (H, W, C) flatten order
    # fc1 (800->256) -> dropout3 (identity) -> fc2 (256->10), fused; fc2 runs
    # lane-padded to 128 outputs inside the kernel and is sliced back to 10.
    logits = fc_fused(flat, prepped["fc1_w"], prepped["fc1_b"],
                      prepped["fc2_w"], prepped["fc2_b"], n_out=10)
    # TODO(synk): nn.Dropout layers are train-mode only; omitted at inference.
    return logits


if __name__ == "__main__":
    key = jax.random.PRNGKey(0)
    pkey, xkey = jax.random.split(key)
    params = init_params(pkey)
    prepped = prepare_params(params)   # one-time weight re-layout (not re-traced per call)

    # Input implied by fc1 = Linear(32*5*5, 256): 1x28x28 images.
    x = jax.random.normal(xkey, (2, 1, 28, 28), jnp.float32)

    logits = jax.jit(cnn_forward)(prepped, x)
    jax.block_until_ready(logits)
    assert logits.shape == (2, 10)
    print("KERNEL_OK")
</pallas_src>

<mosaic_0001>
module attributes {stable_mosaic.version = 11 : i64} {
  func.func @_conv_relu_pool_kernel(%arg0: i32, %arg1: memref<4x144x25xbf16, #tpu.memory_space<vmem>>, %arg2: memref<25x16xbf16, #tpu.memory_space<vmem>>, %arg3: memref<1x16xf32, #tpu.memory_space<vmem>>, %arg4: memref<144x16xbf16, #tpu.memory_space<vmem>>) attributes {dimension_semantics = [#tpu.dimension_semantics<parallel>], iteration_bounds = array<i64: 2>, scalar_prefetch = 0 : i64, scratch_operands = 0 : i64, tpu.core_type = #tpu.core_type<tc>, window_params = [{transform_indices = @transform_0, window_bounds = array<i64: 4, 144, 25>}, {pipeline_mode = #tpu.pipeline_mode<synchronous>, transform_indices = @transform_1, window_bounds = array<i64: 25, 16>}, {pipeline_mode = #tpu.pipeline_mode<synchronous>, transform_indices = @transform_2, window_bounds = array<i64: 1, 16>}, {transform_indices = @transform_3, window_bounds = array<i64: 144, 16>}]} {
    %c0 = arith.constant 0 : index
    %c0_0 = arith.constant 0 : index
    %c0_1 = arith.constant 0 : index
    %0 = vector.load %arg1[%c0, %c0_0, %c0_1] : memref<4x144x25xbf16, #tpu.memory_space<vmem>>, vector<4x144x25xbf16>
    %1 = vector.shape_cast %0 : vector<4x144x25xbf16> to vector<576x25xbf16>
    %c0_2 = arith.constant 0 : index
    %c0_3 = arith.constant 0 : index
    %2 = vector.load %arg2[%c0_2, %c0_3] : memref<25x16xbf16, #tpu.memory_space<vmem>>, vector<25x16xbf16>
    %cst = arith.constant dense<0.000000e+00> : vector<576x16xf32>
    %3 = tpu.matmul %1, %2, %cst {dimension_numbers = #tpu.dot_dimension_numbers<[1], [0], [0], [1], [0, 0, 1, 1], [], []>} : vector<576x25xbf16>, vector<25x16xbf16>, vector<576x16xf32> -> vector<576x16xf32>
    %4 = vector.extract_strided_slice %3 {offsets = [0, 0], sizes = [144, 16], strides = [1, 1]} : vector<576x16xf32> to vector<144x16xf32>
    %5 = vector.extract_strided_slice %3 {offsets = [144, 0], sizes = [144, 16], strides = [1, 1]} : vector<576x16xf32> to vector<144x16xf32>
    %6 = arith.maximumf %4, %5 : vector<144x16xf32>
    %7 = vector.extract_strided_slice %3 {offsets = [288, 0], sizes = [144, 16], strides = [1, 1]} : vector<576x16xf32> to vector<144x16xf32>
    %8 = vector.extract_strided_slice %3 {offsets = [432, 0], sizes = [144, 16], strides = [1, 1]} : vector<576x16xf32> to vector<144x16xf32>
    %9 = arith.maximumf %7, %8 : vector<144x16xf32>
    %10 = arith.maximumf %6, %9 : vector<144x16xf32>
    %c0_4 = arith.constant 0 : index
    %c0_5 = arith.constant 0 : index
    %11 = vector.load %arg3[%c0_4, %c0_5] : memref<1x16xf32, #tpu.memory_space<vmem>>, vector<1x16xf32>
    %12 = vector.broadcast %11 : vector<1x16xf32> to vector<144x16xf32>
    %13 = arith.addf %10, %12 : vector<144x16xf32>
    %cst_6 = arith.constant 0.000000e+00 : f32
    %14 = vector.broadcast %cst_6 : f32 to vector<144x16xf32>
    %15 = arith.maximumf %13, %14 : vector<144x16xf32>
    %16 = arith.truncf %15 : vector<144x16xf32> to vector<144x16xbf16>
    %c0_7 = arith.constant 0 : index
    %c0_8 = arith.constant 0 : index
    %17 = vector.load %arg4[%c0_7, %c0_8] : memref<144x16xbf16, #tpu.memory_space<vmem>>, vector<144x16xbf16>
    tpu.vector_store %arg4[%c0_7, %c0_8], %16 {strides = array<i32>} : memref<144x16xbf16, #tpu.memory_space<vmem>>, vector<144x16xbf16>,
    return
  }
  func.func @transform_0(%arg0: i32) -> (i32, i32, i32) {
    %c0_i32 = arith.constant 0 : i32
    %c0_i32_0 = arith.constant 0 : i32
    %c0_i32_1 = arith.constant 0 : i32
    return %c0_i32, %arg0, %c0_i32_0 : i32, i32, i32
  }
  func.func @transform_1(%arg0: i32) -> (i32, i32) {
    %c0_i32 = arith.constant 0 : i32
    %c0_i32_0 = arith.constant 0 : i32
    %c0_i32_1 = arith.constant 0 : i32
    return %c0_i32, %c0_i32_0 : i32, i32
  }
  func.func @transform_2(%arg0: i32) -> (i32, i32) {
    %c0_i32 = arith.constant 0 : i32
    %c0_i32_0 = arith.constant 0 : i32
    %c0_i32_1 = arith.constant 0 : i32
    return %c0_i32, %c0_i32_0 : i32, i32
  }
  func.func @transform_3(%arg0: i32) -> (i32, i32) {
    %c0_i32 = arith.constant 0 : i32
    %c0_i32_0 = arith.constant 0 : i32
    return %arg0, %c0_i32 : i32, i32
  }
}

module attributes {stable_mosaic.version = 11 : i64} {
  func.func @_conv_relu_pool_kernel(%arg0: i32, %arg1: memref<4x32x144xbf16, #tpu.memory_space<vmem>>, %arg2: memref<144x32xbf16, #tpu.memory_space<vmem>>, %arg3: memref<1x32xf32, #tpu.memory_space<vmem>>, %arg4: memref<32x32xbf16, #tpu.memory_space<vmem>>) attributes {dimension_semantics = [#tpu.dimension_semantics<parallel>], iteration_bounds = array<i64: 2>, scalar_prefetch = 0 : i64, scratch_operands = 0 : i64, tpu.core_type = #tpu.core_type<tc>, window_params = [{transform_indices = @transform_0, window_bounds = array<i64: 4, 32, 144>}, {pipeline_mode = #tpu.pipeline_mode<synchronous>, transform_indices = @transform_1, window_bounds = array<i64: 144, 32>}, {pipeline_mode = #tpu.pipeline_mode<synchronous>, transform_indices = @transform_2, window_bounds = array<i64: 1, 32>}, {transform_indices = @transform_3, window_bounds = array<i64: 32, 32>}]} {
    %c0 = arith.constant 0 : index
    %c0_0 = arith.constant 0 : index
    %c0_1 = arith.constant 0 : index
    %0 = vector.load %arg1[%c0, %c0_0, %c0_1] : memref<4x32x144xbf16, #tpu.memory_space<vmem>>, vector<4x32x144xbf16>
    %1 = vector.shape_cast %0 : vector<4x32x144xbf16> to vector<128x144xbf16>
    %c0_2 = arith.constant 0 : index
    %c0_3 = arith.constant 0 : index
    %2 = vector.load %arg2[%c0_2, %c0_3] : memref<144x32xbf16, #tpu.memory_space<vmem>>, vector<144x32xbf16>
    %cst = arith.constant dense<0.000000e+00> : vector<128x32xf32>
    %3 = tpu.matmul %1, %2, %cst {dimension_numbers = #tpu.dot_dimension_numbers<[1], [0], [0], [1], [0, 0, 1, 1], [], []>} : vector<128x144xbf16>, vector<144x32xbf16>, vector<128x32xf32> -> vector<128x32xf32>
    %4 = vector.extract_strided_slice %3 {offsets = [0, 0], sizes = [32, 32], strides = [1, 1]} : vector<128x32xf32> to vector<32x32xf32>
    %5 = vector.extract_strided_slice %3 {offsets = [32, 0], sizes = [32, 32], strides = [1, 1]} : vector<128x32xf32> to vector<32x32xf32>
    %6 = arith.maximumf %4, %5 : vector<32x32xf32>
    %7 = vector.extract_strided_slice %3 {offsets = [64, 0], sizes = [32, 32], strides = [1, 1]} : vector<128x32xf32> to vector<32x32xf32>
    %8 = vector.extract_strided_slice %3 {offsets = [96, 0], sizes = [32, 32], strides = [1, 1]} : vector<128x32xf32> to vector<32x32xf32>
    %9 = arith.maximumf %7, %8 : vector<32x32xf32>
    %10 = arith.maximumf %6, %9 : vector<32x32xf32>
    %c0_4 = arith.constant 0 : index
    %c0_5 = arith.constant 0 : index
    %11 = vector.load %arg3[%c0_4, %c0_5] : memref<1x32xf32, #tpu.memory_space<vmem>>, vector<1x32xf32>
    %12 = vector.broadcast %11 : vector<1x32xf32> to vector<32x32xf32>
    %13 = arith.addf %10, %12 : vector<32x32xf32>
    %cst_6 = arith.constant 0.000000e+00 : f32
    %14 = vector.broadcast %cst_6 : f32 to vector<32x32xf32>
    %15 = arith.maximumf %13, %14 : vector<32x32xf32>
    %16 = arith.truncf %15 : vector<32x32xf32> to vector<32x32xbf16>
    %c0_7 = arith.constant 0 : index
    %c0_8 = arith.constant 0 : index
    %17 = vector.load %arg4[%c0_7, %c0_8] : memref<32x32xbf16, #tpu.memory_space<vmem>>, vector<32x32xbf16>
    tpu.vector_store %arg4[%c0_7, %c0_8], %16 {strides = array<i32>} : memref<32x32xbf16, #tpu.memory_space<vmem>>, vector<32x32xbf16>,
    return
  }
  func.func @transform_0(%arg0: i32) -> (i32, i32, i32) {
    %c0_i32 = arith.constant 0 : i32
    %c0_i32_0 = arith.constant 0 : i32
    %c0_i32_1 = arith.constant 0 : i32
    return %c0_i32, %arg0, %c0_i32_0 : i32, i32, i32
  }
  func.func @transform_1(%arg0: i32) -> (i32, i32) {
    %c0_i32 = arith.constant 0 : i32
    %c0_i32_0 = arith.constant 0 : i32
    %c0_i32_1 = arith.constant 0 : i32
    return %c0_i32, %c0_i32_0 : i32, i32
  }
  func.func @transform_2(%arg0: i32) -> (i32, i32) {
    %c0_i32 = arith.constant 0 : i32
    %c0_i32_0 = arith.constant 0 : i32
    %c0_i32_1 = arith.constant 0 : i32
    return %c0_i32, %c0_i32_0 : i32, i32
  }
  func.func @transform_3(%arg0: i32) -> (i32, i32) {
    %c0_i32 = arith.constant 0 : i32
    %c0_i32_0 = arith.constant 0 : i32
    return %arg0, %c0_i32 : i32, i32
  }
}

module attributes {stable_mosaic.version = 11 : i64} {
  func.func @_fc_fused_kernel(%arg0: i32, %arg1: memref<16x800xbf16, #tpu.memory_space<vmem>>, %arg2: memref<800x256xbf16, #tpu.memory_space<vmem>>, %arg3: memref<1x256xf32, #tpu.memory_space<vmem>>, %arg4: memref<256x128xbf16, #tpu.memory_space<vmem>>, %arg5: memref<1x128xf32, #tpu.memory_space<vmem>>, %arg6: memref<16x128xf32, #tpu.memory_space<vmem>>) attributes {dimension_semantics = [#tpu.dimension_semantics<parallel>], iteration_bounds = array<i64: 1>, scalar_prefetch = 0 : i64, scratch_operands = 0 : i64, tpu.core_type = #tpu.core_type<tc>, window_params = [{transform_indices = @transform_0, window_bounds = array<i64: 16, 800>}, {pipeline_mode = #tpu.pipeline_mode<synchronous>, transform_indices = @transform_1, window_bounds = array<i64: 800, 256>}, {pipeline_mode = #tpu.pipeline_mode<synchronous>, transform_indices = @transform_2, window_bounds = array<i64: 1, 256>}, {pipeline_mode = #tpu.pipeline_mode<synchronous>, transform_indices = @transform_3, window_bounds = array<i64: 256, 128>}, {pipeline_mode = #tpu.pipeline_mode<synchronous>, transform_indices = @transform_4, window_bounds = array<i64: 1, 128>}, {transform_indices = @transform_5, window_bounds = array<i64: 16, 128>}]} {
    %c0 = arith.constant 0 : index
    %c0_0 = arith.constant 0 : index
    %0 = vector.load %arg1[%c0, %c0_0] : memref<16x800xbf16, #tpu.memory_space<vmem>>, vector<16x800xbf16>
    %c0_1 = arith.constant 0 : index
    %c0_2 = arith.constant 0 : index
    %1 = vector.load %arg2[%c0_1, %c0_2] : memref<800x256xbf16, #tpu.memory_space<vmem>>, vector<800x256xbf16>
    %cst = arith.constant dense<0.000000e+00> : vector<16x256xf32>
    %2 = tpu.matmul %0, %1, %cst {dimension_numbers = #tpu.dot_dimension_numbers<[1], [0], [0], [1], [0, 0, 1, 1], [], []>} : vector<16x800xbf16>, vector<800x256xbf16>, vector<16x256xf32> -> vector<16x256xf32>
    %c0_3 = arith.constant 0 : index
    %c0_4 = arith.constant 0 : index
    %3 = vector.load %arg3[%c0_3, %c0_4] : memref<1x256xf32, #tpu.memory_space<vmem>>, vector<1x256xf32>
    %4 = vector.broadcast %3 : vector<1x256xf32> to vector<16x256xf32>
    %5 = arith.addf %2, %4 : vector<16x256xf32>
    %6 = arith.truncf %5 : vector<16x256xf32> to vector<16x256xbf16>
    %c0_5 = arith.constant 0 : index
    %c0_6 = arith.constant 0 : index
    %7 = vector.load %arg4[%c0_5, %c0_6] : memref<256x128xbf16, #tpu.memory_space<vmem>>, vector<256x128xbf16>
    %cst_7 = arith.constant dense<0.000000e+00> : vector<16x128xf32>
    %8 = tpu.matmul %6, %7, %cst_7 {dimension_numbers = #tpu.dot_dimension_numbers<[1], [0], [0], [1], [0, 0, 1, 1], [], []>} : vector<16x256xbf16>, vector<256x128xbf16>, vector<16x128xf32> -> vector<16x128xf32>
    %c0_8 = arith.constant 0 : index
    %c0_9 = arith.constant 0 : index
    %9 = vector.load %arg5[%c0_8, %c0_9] : memref<1x128xf32, #tpu.memory_space<vmem>>, vector<1x128xf32>
    %10 = vector.broadcast %9 : vector<1x128xf32> to vector<16x128xf32>
    %11 = arith.addf %8, %10 : vector<16x128xf32>
    %c0_10 = arith.constant 0 : index
    %c0_11 = arith.constant 0 : index
    %12 = vector.load %arg6[%c0_10, %c0_11] : memref<16x128xf32, #tpu.memory_space<vmem>>, vector<16x128xf32>
    tpu.vector_store %arg6[%c0_10, %c0_11], %11 {strides = array<i32>} : memref<16x128xf32, #tpu.memory_space<vmem>>, vector<16x128xf32>,
    return
  }
  func.func @transform_0(%arg0: i32) -> (i32, i32) {
    %c0_i32 = arith.constant 0 : i32
    %c0_i32_0 = arith.constant 0 : i32
    return %arg0, %c0_i32 : i32, i32
  }
  func.func @transform_1(%arg0: i32) -> (i32, i32) {
    %c0_i32 = arith.constant 0 : i32
    %c0_i32_0 = arith.constant 0 : i32
    %c0_i32_1 = arith.constant 0 : i32
    return %c0_i32, %c0_i32_0 : i32, i32
  }
  func.func @transform_2(%arg0: i32) -> (i32, i32) {
    %c0_i32 = arith.constant 0 : i32
    %c0_i32_0 = arith.constant 0 : i32
    %c0_i32_1 = arith.constant 0 : i32
    return %c0_i32, %c0_i32_0 : i32, i32
  }
  func.func @transform_3(%arg0: i32) -> (i32, i32) {
    %c0_i32 = arith.constant 0 : i32
    %c0_i32_0 = arith.constant 0 : i32
    %c0_i32_1 = arith.constant 0 : i32
    return %c0_i32, %c0_i32_0 : i32, i32
  }
  func.func @transform_4(%arg0: i32) -> (i32, i32) {
    %c0_i32 = arith.constant 0 : i32
    %c0_i32_0 = arith.constant 0 : i32
    %c0_i32_1 = arith.constant 0 : i32
    return %c0_i32, %c0_i32_0 : i32, i32
  }
  func.func @transform_5(%arg0: i32) -> (i32, i32) {
    %c0_i32 = arith.constant 0 : i32
    %c0_i32_0 = arith.constant 0 : i32
    return %arg0, %c0_i32 : i32, i32
  }
}

</mosaic_0001>

<bundles_post_ra>
// kernel: cnn_forward.3
= control target key start
LH: loop header
LB: loop body
LE: loop exit
PB: predicated region body
PF: predicated region fallthrough
CT: control target
= control target key end

     0   :  { %s1803_s12 = smov 0   ;;  %s1805_s13 = smov 0   ;;  %s2162_s0 = inlined_call_operand.vmem [shape: bf16[4,288,25], index: 0, kind: input, shape index: {}]   ;;  %s2163_s1 = inlined_call_operand.vmem [shape: bf16[25,16], index: 1, kind: input, shape index: {}]   ;;  %s2164_s2 = inlined_call_operand.vmem [shape: f32[1,16], index: 2, kind: input, shape index: {}]   ;;  %s2165_s3 = inlined_call_operand.vmem [shape: bf16[288,16], index: 3, kind: output, shape index: {}]  }
   0x1   :  { %s1807_s14 = smov 0  }
   0x2 LB: > { %s1454_s15 = sadd.s32 4294967295, %s1780_s14   ;;  %s1820_s16 = sadd.s32 1, %s1780_s14   ;;  %s1780_s14 = sphi %s1807_s14, %s2168_s14   ;;  %s1776_s13 = sphi %s1805_s13, %s2167_s13   ;;  %s1772_s12 = sphi %s1803_s12, %s2166_s12  }
   0x3   : > { %s17_s17 = ssub.s32 %s1780_s14, %s1820_s16  ;;  %s20_s18 = sadd.s32 1, %s1776_s13 }
   0x4   : > { %p18_p0 = scmp.eq.s32.totalorder %s17_s17, 0  ;;  %p27_p1 = scmp.ne.s32.totalorder %s1776_s13, %s1772_s12 }
   0x5   : > { %p28_p2 = scmp.eq.s32.totalorder %s1780_s14, 0  ;;  %p1457_p4 = scmp.ge.s32.totalorder %s1780_s14, 2 }
   0x6   : > { %s1829_s19 = scalar_select %p18_p0, %s1776_s13, %s20_s18  }
   0x7   : > { %p29_p3 = por %p28_p2, %p27_p1  ;;  %127 = sbr.rel (%p1457_p4) target bundleno = 37 (0x25), region = 24 }
   0xe   : > { %130 = sbr.rel (!%p29_p3) target bundleno = 37 (0x25), region = 28  ;;  %s132_s20 = sand.u32 (%p29_p3), 1, %s1776_s13  }
   0xf   : > { %s1556_s21 = smul.u32 (%p29_p3), 72, %s1780_s14 }
  0x10   : > { %s1693_s22 = smul.u32 (%p29_p3), 288, %s132_s20 }
  0x11   : > { %s1837_s25 = scalar_lea.vmem (%p29_p3), %s2162_s0, %s1556_s21 }
  0x12   : > { %v153_v0 = vld [vmem:[%s1837_s25] sm:$0xff] (%p29_p3)   ;;  %v157_v1 = vld [vmem:[%s1837_s25 + $0x8] sm:$0xff] (%p29_p3)   ;;  %v161_v2 = vld [vmem:[%s1837_s25 + $0x10] sm:$0xff] (%p29_p3)   ;;  %s1842_s26 = scalar_lea.vmem (%p29_p3), [#allocation2], %s1693_s22 }
  0x13   : > { %154 = vst [vmem:[%s1842_s26] sm:$0xff] (%p29_p3), %v153_v0   ;;  %158 = vst [vmem:[%s1842_s26 + $0x8] sm:$0xff] (%p29_p3), %v157_v1   ;;  %v165_v3 = vld [vmem:[%s1837_s25 + $0x18] sm:$0xff] (%p29_p3)   ;;  %v169_v4 = vld [vmem:[%s1837_s25 + $0x20] sm:$0xff] (%p29_p3)  }
  0x14   : > { %162 = vst [vmem:[%s1842_s26 + $0x10] sm:$0xff] (%p29_p3), %v161_v2   ;;  %v173_v5 = vld [vmem:[%s1837_s25 + $0x28] sm:$0xff] (%p29_p3)   ;;  %166 = vst [vmem:[%s1842_s26 + $0x18] sm:$0xff] (%p29_p3), %v165_v3   ;;  %v177_v6 = vld [vmem:[%s1837_s25 + $0x30] sm:$0xff] (%p29_p3)  }
  0x15   : > { %170 = vst [vmem:[%s1842_s26 + $0x20] sm:$0xff] %v169_v4   ;;  %174 = vst [vmem:[%s1842_s26 + $0x28] sm:$0xff] %v173_v5   ;;  %v181_v7 = vld [vmem:[%s1837_s25 + $0x38] sm:$0xff]   ;;  %v185_v8 = vld [vmem:[%s1837_s25 + $0x40] sm:$0xff]  }
  0x16   : > { %178 = vst [vmem:[%s1842_s26 + $0x30] sm:$0xff] %v177_v6   ;;  %182 = vst [vmem:[%s1842_s26 + $0x38] sm:$0xff] %v181_v7   ;;  %v189_v9 = vld [vmem:[%s1837_s25 + $0x90] sm:$0xff]   ;;  %v193_v10 = vld [vmem:[%s1837_s25 + $0x98] sm:$0xff]  }
  0x17   : > { %186 = vst [vmem:[%s1842_s26 + $0x40] sm:$0xff] %v185_v8   ;;  %v197_v11 = vld [vmem:[%s1837_s25 + $0xa0] sm:$0xff]   ;;  %190 = vst [vmem:[%s1842_s26 + $0x48] sm:$0xff] %v189_v9   ;;  %v201_v12 = vld [vmem:[%s1837_s25 + $0xa8] sm:$0xff]  }
  0x18   : > { %194 = vst [vmem:[%s1842_s26 + $0x50] sm:$0xff] %v193_v10   ;;  %198 = vst [vmem:[%s1842_s26 + $0x58] sm:$0xff] %v197_v11   ;;  %v205_v13 = vld [vmem:[%s1837_s25 + $0xb0] sm:$0xff]   ;;  %v209_v14 = vld [vmem:[%s1837_s25 + $0xb8] sm:$0xff]  }
  0x19   : > { %202 = vst [vmem:[%s1842_s26 + $0x60] sm:$0xff] %v201_v12   ;;  %206 = vst [vmem:[%s1842_s26 + $0x68] sm:$0xff] %v205_v13   ;;  %v213_v15 = vld [vmem:[%s1837_s25 + $0xc0] sm:$0xff]   ;;  %v217_v16 = vld [vmem:[%s1837_s25 + $0xc8] sm:$0xff]  }
  0x1a   : > { %210 = vst [vmem:[%s1842_s26 + $0x70] sm:$0xff] %v209_v14   ;;  %v221_v17 = vld [vmem:[%s1837_s25 + $0xd0] sm:$0xff]   ;;  %214 = vst [vmem:[%s1842_s26 + $0x78] sm:$0xff] %v213_v15   ;;  %v225_v18 = vld [vmem:[%s1837_s25 + $0x120] sm:$0xff]  }
  0x1b   : > { %218 = vst [vmem:[%s1842_s26 + $0x80] sm:$0xff] %v217_v16   ;;  %222 = vst [vmem:[%s1842_s26 + $0x88] sm:$0xff] %v221_v17   ;;  %v229_v19 = vld [vmem:[%s1837_s25 + $0x128] sm:$0xff]   ;;  %v233_v20 = vld [vmem:[%s1837_s25 + $0x130] sm:$0xff]  }
  0x1c   : > { %226 = vst [vmem:[%s1842_s26 + $0x90] sm:$0xff] %v225_v18   ;;  %230 = vst [vmem:[%s1842_s26 + $0x98] sm:$0xff] %v229_v19   ;;  %v237_v21 = vld [vmem:[%s1837_s25 + $0x138] sm:$0xff]   ;;  %v241_v22 = vld [vmem:[%s1837_s25 + $0x140] sm:$0xff]  }
  0x1d   : > { %234 = vst [vmem:[%s1842_s26 + $0xa0] sm:$0xff] %v233_v20   ;;  %v245_v23 = vld [vmem:[%s1837_s25 + $0x148] sm:$0xff]   ;;  %238 = vst [vmem:[%s1842_s26 + $0xa8] sm:$0xff] %v237_v21   ;;  %v249_v24 = vld [vmem:[%s1837_s25 + $0x150] sm:$0xff]  }
  0x1e   : > { %242 = vst [vmem:[%s1842_s26 + $0xb0] sm:$0xff] %v241_v22   ;;  %246 = vst [vmem:[%s1842_s26 + $0xb8] sm:$0xff] %v245_v23   ;;  %v253_v25 = vld [vmem:[%s1837_s25 + $0x158] sm:$0xff]   ;;  %v257_v26 = vld [vmem:[%s1837_s25 + $0x160] sm:$0xff]  }
  0x1f   : > { %250 = vst [vmem:[%s1842_s26 + $0xc0] sm:$0xff] %v249_v24   ;;  %254 = vst [vmem:[%s1842_s26 + $0xc8] sm:$0xff] %v253_v25   ;;  %v261_v27 = vld [vmem:[%s1837_s25 + $0x1b0] sm:$0xff]   ;;  %v265_v28 = vld [vmem:[%s1837_s25 + $0x1b8] sm:$0xff]  }
  0x20   : > { %258 = vst [vmem:[%s1842_s26 + $0xd0] sm:$0xff] %v257_v26   ;;  %v269_v29 = vld [vmem:[%s1837_s25 + $0x1c0] sm:$0xff]   ;;  %262 = vst [vmem:[%s1842_s26 + $0xd8] sm:$0xff] %v261_v27   ;;  %v273_v30 = vld [vmem:[%s1837_s25 + $0x1c8] sm:$0xff]  }
  0x21   : > { %266 = vst [vmem:[%s1842_s26 + $0xe0] sm:$0xff] %v265_v28   ;;  %270 = vst [vmem:[%s1842_s26 + $0xe8] sm:$0xff] %v269_v29   ;;  %v277_v31 = vld [vmem:[%s1837_s25 + $0x1d0] sm:$0xff]   ;;  %v281_v32 = vld [vmem:[%s1837_s25 + $0x1d8] sm:$0xff]  }
  0x22   : > { %274 = vst [vmem:[%s1842_s26 + $0xf0] sm:$0xff] %v273_v30   ;;  %278 = vst [vmem:[%s1842_s26 + $0xf8] sm:$0xff] %v277_v31   ;;  %v285_v33 = vld [vmem:[%s1837_s25 + $0x1e0] sm:$0xff]   ;;  %v289_v34 = vld [vmem:[%s1837_s25 + $0x1e8] sm:$0xff]  }
  0x23   : > { %282 = vst [vmem:[%s1842_s26 + $0x100] sm:$0xff] %v281_v32   ;;  %v293_v35 = vld [vmem:[%s1837_s25 + $0x1f0] sm:$0xff]   ;;  %286 = vst [vmem:[%s1842_s26 + $0x108] sm:$0xff] %v285_v33  }
  0x24   : > { %290 = vst [vmem:[%s1842_s26 + $0x110] sm:$0xff] %v289_v34   ;;  %294 = vst [vmem:[%s1842_s26 + $0x118] sm:$0xff] %v293_v35  }
  0x25 PF: > { %p1459_p5 = scmp.ge.s32.totalorder %s1780_s14, 1  ;;  %p462_p6 = scmp.lt.s32.totalorder %s1780_s14, 3 }
  0x27   : > { %p463_p7 = pnand %p1459_p5, %p462_p6 }
  0x28   : > { %v1720_v36 = vld [vmem:[%s2163_s1] sm:$0xff] (!%p463_p7)   ;;  %vm876_vm0 = vcmask (!%p463_p7), 1043456   ;;  %v1721_v37 = vld [vmem:[%s2163_s1 + $0x8] sm:$0x1f] (!%p463_p7)   ;;  %vm877_vm1 = vcmask (!%p463_p7), 1044480   ;;  %s469_s4 = sand.u32 (!%p463_p7), 1, %s1772_s12  }
  0x29   : > { %466 = sbr.rel (%p463_p7) target bundleno = 340 (0x154), region = 69  ;;  %1613 = vmatprep.subr.bf16.mxu0 (!%p463_p7), %v1720_v36  ;;  %1689 = vmatprep.subr.bf16.mxu1 (!%p463_p7), %v1720_v36  ;;  %v1782_v38 = vmov (!%p463_p7), 65535   ;;  %vm767_vm2 = vcmask (!%p463_p7), 203776   ;;  %vm1373_vm3 = vcmask (!%p463_p7), 125952  }
  0x2a   : > { %1614 = vmatpush3.bf16.msra.mxu0 (!%p463_p7), %v1720_v36  ;;  %1691 = vmatpush3.bf16.msra.mxu1 (!%p463_p7), %v1720_v36  ;;  %v878_v39 = vsel (!%p463_p7), %vm876_vm0, 4294967295, %v1782_v38  ;;  %s1694_s5 = smul.u32 (!%p463_p7), 288, %s469_s4 }
  0x2b   : > { %v879_v40 = vsel (!%p463_p7), %vm877_vm1, %v878_v39, 0  ;;  %s493_s7 = smul.u32 (!%p463_p7), 18, %s1454_s15 }
  0x2c   : > { %v881_v41 = vand.u32 (!%p463_p7), %v1721_v37, %v879_v40  ;;  %s1922_s6 = scalar_lea.vmem (!%p463_p7), [#allocation2], %s1694_s5 }
  0x2d   : > { %v1722_v42 = vld [vmem:[%s1922_s6] sm:$0xff] (!%p463_p7)   ;;  %v1723_v43 = vld [vmem:[%s1922_s6 + $0x90] sm:$0xff] (!%p463_p7)   ;;  %v1724_v44 = vld [vmem:[%s1922_s6 + $0x8] sm:$0xff] (!%p463_p7)   ;;  %p494_p8 = scmp.lt.s32.totalorder (!%p463_p7), %s493_s7, 35 }
  0x2e   : > { %1615 = vmatprep.subr.bf16.mxu0 (!%p463_p7), %v881_v41  ;;  %1690 = vmatprep.subr.bf16.mxu1 (!%p463_p7), %v881_v41  ;;  %v1725_v45 = vld [vmem:[%s1922_s6 + $0x98] sm:$0xff] (!%p463_p7)   ;;  %v1726_v46 = vld [vmem:[%s1922_s6 + $0x10] sm:$0xff] (!%p463_p7)   ;;  %v1727_v47 = vld [vmem:[%s1922_s6 + $0xa0] sm:$0xff] (!%p463_p7)  }
  0x2f   : > { %1616 = vmatpush3.bf16.msra.mxu0 (!%p463_p7), %v881_v41  ;;  %1692 = vmatpush3.bf16.msra.mxu1 (!%p463_p7), %v881_v41  ;;  %v1728_v48 = vld [vmem:[%s1922_s6 + $0x18] sm:$0xff] (!%p463_p7)   ;;  %v1729_v49 = vld [vmem:[%s1922_s6 + $0xa8] sm:$0xff] (!%p463_p7)   ;;  %v1730_v50 = vld [vmem:[%s1922_s6 + $0x20] sm:$0xff] (!%p463_p7)  }
  0x30   : > { %1617 = vmatprep.mubr.msk.bf16.mxu0 %vm767_vm2, %v1722_v42  ;;  %1653 = vmatprep.mubr.msk.bf16.mxu1 %vm767_vm2, %v1723_v43  ;;  %v1731_v51 = vld [vmem:[%s1922_s6 + $0xb0] sm:$0xff]   ;;  %v1732_v52 = vld [vmem:[%s1922_s6 + $0x28] sm:$0xff]   ;;  %v1733_v53 = vld [vmem:[%s1922_s6 + $0xb8] sm:$0xff]   ;;  %s2170_s7 = smov (!%p494_p8, %s493_s7), 35 }
  0x31   : > { %v1734_v54 = vld [vmem:[%s1922_s6 + $0x30] sm:$0xff]   ;;  %v1735_v55 = vld [vmem:[%s1922_s6 + $0xc0] sm:$0xff]   ;;  %v1736_v56 = vld [vmem:[%s1922_s6 + $0x38] sm:$0xff]   ;;  %s1460_s10 = sshll.u32 %s2170_s7, 2 }
  0x32   : > { %1618 = vmatmul.mubr.msk.bf16.vlgmr.msra.gmra.mrb[0].mxu0 %vm767_vm2, %v1724_v44  ;;  %1654 = vmatmul.mubr.msk.bf16.vlgmr.msra.gmra.mrb[0].mxu1 %vm767_vm2, %v1725_v45  ;;  %v1737_v57 = vld [vmem:[%s1922_s6 + $0xc8] sm:$0xff]   ;;  %v1738_v58 = vld [vmem:[%s1922_s6 + $0x40] sm:$0xff]   ;;  %v1739_v59 = vld [vmem:[%s1922_s6 + $0xd0] sm:$0xff]   ;;  %s2068_s14 = scalar_lea.vmem %s2165_s3, %s1460_s10 }
  0x33   : > { %1621 = vmatprep.mubr.msk.bf16.mxu0 %vm767_vm2, %v1726_v46  ;;  %1657 = vmatprep.mubr.msk.bf16.mxu1 %vm767_vm2, %v1727_v47  ;;  %v1740_v60 = vld [vmem:[%s1922_s6 + $0x48] sm:$0xff]   ;;  %v1741_v61 = vld [vmem:[%s1922_s6 + $0xd8] sm:$0xff]   ;;  %v1742_v62 = vld [vmem:[%s1922_s6 + $0x50] sm:$0xff]  }
  0x34   : > { %v1743_v63 = vld [vmem:[%s1922_s6 + $0xe0] sm:$0xff]   ;;  %v1744_v0 = vld [vmem:[%s1922_s6 + $0x58] sm:$0xff]   ;;  %v1745_v1 = vld [vmem:[%s1922_s6 + $0xe8] sm:$0xff]  }
  0x35   : > { %v1746_v2 = vld [vmem:[%s1922_s6 + $0x60] sm:$0xff]   ;;  %v1747_v3 = vld [vmem:[%s1922_s6 + $0xf0] sm:$0xff]   ;;  %v1748_v4 = vld [vmem:[%s1922_s6 + $0x68] sm:$0xff]  }
  0x36   : > { %v1749_v5 = vld [vmem:[%s1922_s6 + $0xf8] sm:$0xff]   ;;  %v1750_v6 = vld [vmem:[%s1922_s6 + $0x70] sm:$0xff]   ;;  %v1751_v7 = vld [vmem:[%s1922_s6 + $0x100] sm:$0xff]  }
  0x37   : > { %v1752_v8 = vld [vmem:[%s1922_s6 + $0x78] sm:$0xff]   ;;  %v1753_v9 = vld [vmem:[%s1922_s6 + $0x108] sm:$0xff]   ;;  %v1754_v10 = vld [vmem:[%s1922_s6 + $0x80] sm:$0xff]  }
  0x38   : > { %v1755_v11 = vld [vmem:[%s1922_s6 + $0x110] sm:$0xff]   ;;  %v1756_v12 = vld [vmem:[%s1922_s6 + $0x88] sm:$0xff]   ;;  %v1757_v13 = vld [vmem:[%s1922_s6 + $0x118] sm:$0xff]  }
  0x3a   : > { %1622 = vmatmul.mubr.msk.bf16.gmra.mrb[4].mxu0 %vm767_vm2, %v1728_v48  ;;  %1658 = vmatmul.mubr.msk.bf16.gmra.mrb[4].mxu1 %vm767_vm2, %v1729_v49 }
  0x3b   : > { %1625 = vmatprep.mubr.msk.bf16.mxu0 %vm767_vm2, %v1730_v50  ;;  %1661 = vmatprep.mubr.msk.bf16.mxu1 %vm767_vm2, %v1731_v51 }
  0x42   : > { %1626 = vmatmul.mubr.msk.bf16.gmra.mrb[8].mxu0 %vm767_vm2, %v1732_v52  ;;  %1662 = vmatmul.mubr.msk.bf16.gmra.mrb[8].mxu1 %vm767_vm2, %v1733_v53  ;;  %v2057_v52 = vld [vmem:[%s2164_s2] ss:$0 sm:$0xff] }
  0x43   : > { %1629 = vmatprep.mubr.msk.bf16.mxu0 %vm767_vm2, %v1734_v54  ;;  %1665 = vmatprep.mubr.msk.bf16.mxu1 %vm767_vm2, %v1735_v55 }
  0x4a   : > { %1630 = vmatmul.mubr.msk.bf16.gmra.mrb[12].mxu0 %vm767_vm2, %v1736_v56  ;;  %1666 = vmatmul.mubr.msk.bf16.gmra.mrb[12].mxu1 %vm767_vm2, %v1737_v57 }
  0x4b   : > { %1633 = vmatprep.mubr.msk.bf16.mxu0 %vm767_vm2, %v1738_v58  ;;  %1669 = vmatprep.mubr.msk.bf16.mxu1 %vm767_vm2, %v1739_v59 }
  0x52   : > { %1634 = vmatmul.mubr.msk.bf16.gmra.mrb[16].mxu0 %vm767_vm2, %v1740_v60  ;;  %1670 = vmatmul.mubr.msk.bf16.gmra.mrb[16].mxu1 %vm767_vm2, %v1741_v61 }
  0x53   : > { %1637 = vmatprep.mubr.msk.bf16.mxu0 %vm767_vm2, %v1742_v62  ;;  %1673 = vmatprep.mubr.msk.bf16.mxu1 %vm767_vm2, %v1743_v63 }
  0x5a   : > { %1638 = vmatmul.mubr.msk.bf16.gmra.mrb[20].mxu0 %vm767_vm2, %v1744_v0  ;;  %1674 = vmatmul.mubr.msk.bf16.gmra.mrb[20].mxu1 %vm767_vm2, %v1745_v1 }
  0x5b   : > { %1641 = vmatprep.mubr.msk.bf16.mxu0 %vm767_vm2, %v1746_v2  ;;  %1677 = vmatprep.mubr.msk.bf16.mxu1 %vm767_vm2, %v1747_v3 }
  0x62   : > { %1642 = vmatmul.mubr.msk.bf16.gmra.mrb[24].mxu0 %vm767_vm2, %v1748_v4  ;;  %1678 = vmatmul.mubr.msk.bf16.gmra.mrb[24].mxu1 %vm767_vm2, %v1749_v5 }
  0x63   : > { %1645 = vmatprep.mubr.msk.bf16.mxu0 %vm767_vm2, %v1750_v6  ;;  %1681 = vmatprep.mubr.msk.bf16.mxu1 %vm767_vm2, %v1751_v7 }
  0x6a   : > { %1646 = vmatmul.mubr.msk.bf16.gmra.mrb[28].mxu0 %vm767_vm2, %v1752_v8  ;;  %1682 = vmatmul.mubr.msk.bf16.gmra.mrb[28].mxu1 %vm767_vm2, %v1753_v9 }
  0x6b   : > { %1649 = vmatprep.mubr.msk.bf16.mxu0 %vm767_vm2, %v1754_v10  ;;  %1685 = vmatprep.mubr.msk.bf16.mxu1 %vm767_vm2, %v1755_v11 }
  0x72   : > { %1650 = vmatmul.mubr.msk.bf16.gmra.mrb[32].mxu0 %vm767_vm2, %v1756_v12  ;;  %1686 = vmatmul.mubr.msk.bf16.gmra.mrb[32].mxu1 %vm767_vm2, %v1757_v13 }
 0x105   : > { %v1996_v14 = vpop.f32.mrb[0].mxu0  ;;  %v1998_v15 = vpop.f32.mrb[0].mxu1 }
 0x106   : > { %v917_v16 = vpop.f32.mrb[1].mxu0  ;;  %v1061_v17 = vpop.f32.mrb[1].mxu1 }
 0x107   : > { %v2000_v18 = vpop.f32.mrb[2].mxu0  ;;  %v2002_v19 = vpop.f32.mrb[2].mxu1 }
 0x108   : > { %v920_v20 = vpop.f32.mrb[3].mxu0  ;;  %v1064_v21 = vpop.f32.mrb[3].mxu1 }
 0x10d   : > { %v2004_v22 = vpop.f32.mrb[4].mxu0  ;;  %v2006_v23 = vpop.f32.mrb[4].mxu1 }
 0x10e   : > { %v933_v24 = vpop.f32.mrb[5].mxu0  ;;  %v1077_v25 = vpop.f32.mrb[5].mxu1 }
 0x10f   : > { %v2008_v26 = vpop.f32.mrb[6].mxu0  ;;  %v2010_v27 = vpop.f32.mrb[6].mxu1 }
 0x110   : > { %v2012_v28 = vpop.f32.mrb[7].mxu0  ;;  %v2014_v29 = vpop.f32.mrb[7].mxu1 }
 0x115   : > { %v2016_v30 = vpop.f32.mrb[8].mxu0  ;;  %v2018_v31 = vpop.f32.mrb[8].mxu1 }
 0x116   : > { %v2020_v32 = vpop.f32.mrb[9].mxu0  ;;  %v2022_v33 = vpop.f32.mrb[9].mxu1 }
 0x117   : > { %v2024_v34 = vpop.f32.mrb[10].mxu0  ;;  %v2026_v35 = vpop.f32.mrb[10].mxu1 }
 0x118   : > { %v2028_v36 = vpop.f32.mrb[11].mxu0  ;;  %v2030_v37 = vpop.f32.mrb[11].mxu1 }
 0x11d   : > { %v2032_v38 = vpop.f32.mrb[12].mxu0  ;;  %v2034_v39 = vpop.f32.mrb[12].mxu1 }
 0x11e   : > { %v2036_v40 = vpop.f32.mrb[13].mxu0  ;;  %v2038_v41 = vpop.f32.mrb[13].mxu1 }
 0x11f   : > { %v2042_v42 = vpop.f32.mrb[14].mxu0  ;;  %v2044_v43 = vpop.f32.mrb[14].mxu1 }
 0x120   : > { %v2046_v44 = vpop.f32.mrb[15].mxu0  ;;  %v2048_v45 = vpop.f32.mrb[15].mxu1 }
 0x125   : > { %v1635_v46 = vpop.f32.mrb[16].mxu0  ;;  %v1671_v47 = vpop.f32.mrb[16].mxu1 }
 0x126   : > { %v1204_v48 = vmax.f32 %v917_v16, %v1635_v46  ;;  %v1222_v49 = vmax.f32 %v1061_v17, %v1671_v47  ;;  %v2050_v50 = vpop.f32.mrb[17].mxu0  ;;  %v2052_v51 = vpop.f32.mrb[17].mxu1 }
 0x127   : > { %v1636_v53 = vpop.f32.mrb[18].mxu0  ;;  %v1672_v54 = vpop.f32.mrb[18].mxu1 }
 0x128   : > { %v1240_v55 = vmax.f32 %v1204_v48, %v1222_v49  ;;  %v1205_v56 = vmax.f32 %v920_v20, %v1636_v53  ;;  %v1223_v57 = vmax.f32 %v1064_v21, %v1672_v54  ;;  %v2059_v58 = vpop.f32.mrb[19].mxu0  ;;  %v2061_v59 = vpop.f32.mrb[19].mxu1 }
 0x12a   : > { %v1265_v60 = vadd.f32 %v2057_v52, %v1240_v55  ;;  %v1241_v61 = vmax.f32 %v1205_v56, %v1223_v57 }
 0x12c   : > { %v1283_v62 = vmax.f32 %v1265_v60, 0.0  ;;  %v1266_v63 = vadd.f32 %v2057_v52, %v1241_v61 }
 0x12d   : > { %v1639_v0 = vpop.f32.mrb[20].mxu0  ;;  %v1675_v1 = vpop.f32.mrb[20].mxu1 }
 0x12e   : > { %v1557_v2 = vpack.c.bf16 %v1283_v62, %v1283_v62  ;;  %v1284_v3 = vmax.f32 %v1266_v63, 0.0  ;;  %v1208_v4 = vmax.f32 %v933_v24, %v1639_v0  ;;  %v1226_v5 = vmax.f32 %v1077_v25, %v1675_v1  ;;  %v997_v6 = vpop.f32.mrb[21].mxu0  ;;  %v1141_v7 = vpop.f32.mrb[21].mxu1 }
 0x12f   : > { %v1206_v8 = vmax.f32 %v1996_v14, %v997_v6  ;;  %v1224_v9 = vmax.f32 %v1998_v15, %v1141_v7  ;;  %v1640_v10 = vpop.f32.mrb[22].mxu0  ;;  %v1676_v11 = vpop.f32.mrb[22].mxu1 }
 0x130   : > { %1374 = vst.msk [vmem:[%s2068_s14] sm:$0xf] %vm1373_vm3, %v1557_v2  ;;  %v1558_v12 = vpack.c.bf16 %v1284_v3, %v1284_v3  ;;  %v1244_v13 = vmax.f32 %v1208_v4, %v1226_v5  ;;  %v1209_v16 = vmax.f32 %v2012_v28, %v1640_v10  ;;  %v1227_v17 = vmax.f32 %v2014_v29, %v1676_v11  ;;  %v1000_v20 = vpop.f32.mrb[23].mxu0  ;;  %v1144_v21 = vpop.f32.mrb[23].mxu1 }
 0x131   : > { %v1242_v24 = vmax.f32 %v1206_v8, %v1224_v9  ;;  %v1207_v25 = vmax.f32 %v2000_v18, %v1000_v20  ;;  %v1225_v46 = vmax.f32 %v2002_v19, %v1144_v21 }
 0x132   : > { %1375 = vst.msk [vmem:[%s2068_s14 + $0x4] sm:$0xf] %vm1373_vm3, %v1558_v12  ;;  %v1269_v14 = vadd.f32 %v2057_v52, %v1244_v13  ;;  %v1245_v15 = vmax.f32 %v1209_v16, %v1227_v17 }
 0x133   : > { %v1267_v47 = vadd.f32 %v2057_v52, %v1242_v24  ;;  %v1243_v48 = vmax.f32 %v1207_v25, %v1225_v46 }
 0x134   : > { %v1287_v49 = vmax.f32 %v1269_v14, 0.0  ;;  %v1270_v28 = vadd.f32 %v2057_v52, %v1245_v15 }
 0x135   : > { %v1285_v53 = vmax.f32 %v1267_v47, 0.0  ;;  %v1268_v29 = vadd.f32 %v2057_v52, %v1243_v48  ;;  %v1643_v54 = vpop.f32.mrb[24].mxu0  ;;  %v1679_v55 = vpop.f32.mrb[24].mxu1 }
 0x136   : > { %v1561_v18 = vpack.c.bf16 %v1287_v49, %v1287_v49  ;;  %v1288_v56 = vmax.f32 %v1270_v28, 0.0  ;;  %v1212_v19 = vmax.f32 %v2020_v32, %v1643_v54  ;;  %v1230_v57 = vmax.f32 %v2022_v33, %v1679_v55  ;;  %v1013_v60 = vpop.f32.mrb[25].mxu0  ;;  %v1157_v61 = vpop.f32.mrb[25].mxu1 }
 0x137   : > { %v1559_v62 = vpack.c.bf16 %v1285_v53, %v1285_v53  ;;  %v1286_v63 = vmax.f32 %v1268_v29, 0.0  ;;  %v1210_v0 = vmax.f32 %v2004_v22, %v1013_v60  ;;  %v1228_v1 = vmax.f32 %v2006_v23, %v1157_v61  ;;  %v1644_v2 = vpop.f32.mrb[26].mxu0  ;;  %v1680_v3 = vpop.f32.mrb[26].mxu1 }
 0x138   : > { %1378 = vst.msk [vmem:[%s2068_s14 + $0x10] sm:$0xf] %vm1373_vm3, %v1561_v18  ;;  %v1562_v4 = vpack.c.bf16 %v1288_v56, %v1288_v56  ;;  %v1248_v5 = vmax.f32 %v1212_v19, %v1230_v57  ;;  %v1213_v32 = vmax.f32 %v2028_v36, %v1644_v2  ;;  %v1231_v33 = vmax.f32 %v2030_v37, %v1680_v3  ;;  %v1016_v6 = vpop.f32.mrb[27].mxu0  ;;  %v1160_v7 = vpop.f32.mrb[27].mxu1 }
 0x139   : > { %1376 = vst.msk [vmem:[%s2068_s14 + $0x8] sm:$0xf] %vm1373_vm3, %v1559_v62  ;;  %v1560_v8 = vpack.c.bf16 %v1286_v63, %v1286_v63  ;;  %v1246_v22 = vmax.f32 %v1210_v0, %v1228_v1  ;;  %v1211_v9 = vmax.f32 %v2008_v26, %v1016_v6  ;;  %v1229_v23 = vmax.f32 %v2010_v27, %v1160_v7 }
 0x13a   : > { %1379 = vst.msk [vmem:[%s2068_s14 + $0x14] sm:$0xf] %vm1373_vm3, %v1562_v4  ;;  %v1273_v10 = vadd.f32 %v2057_v52, %v1248_v5  ;;  %v1249_v11 = vmax.f32 %v1213_v32, %v1231_v33 }
 0x13b   : > { %1377 = vst.msk [vmem:[%s2068_s14 + $0xc] sm:$0xf] %vm1373_vm3, %v1560_v8  ;;  %v1271_v36 = vadd.f32 %v2057_v52, %v1246_v22  ;;  %v1247_v37 = vmax.f32 %v1211_v9, %v1229_v23 }
 0x13c   : > { %v1291_v12 = vmax.f32 %v1273_v10, 0.0  ;;  %v1274_v13 = vadd.f32 %v2057_v52, %v1249_v11 }
 0x13d   : > { %v1289_v16 = vmax.f32 %v1271_v36, 0.0  ;;  %v1272_v17 = vadd.f32 %v2057_v52, %v1247_v37  ;;  %v1647_v26 = vpop.f32.mrb[28].mxu0  ;;  %v1683_v20 = vpop.f32.mrb[28].mxu1 }
 0x13e   : > { %v1565_v27 = vpack.c.bf16 %v1291_v12, %v1291_v12  ;;  %v1292_v21 = vmax.f32 %v1274_v13, 0.0  ;;  %v1216_v24 = vmax.f32 %v2036_v40, %v1647_v26  ;;  %v1234_v25 = vmax.f32 %v2038_v41, %v1683_v20  ;;  %v1029_v46 = vpop.f32.mrb[29].mxu0  ;;  %v1173_v14 = vpop.f32.mrb[29].mxu1 }
 0x13f   : > { %v1563_v15 = vpack.c.bf16 %v1289_v16, %v1289_v16  ;;  %v1290_v47 = vmax.f32 %v1272_v17, 0.0  ;;  %v1214_v48 = vmax.f32 %v2016_v30, %v1029_v46  ;;  %v1232_v49 = vmax.f32 %v2018_v31, %v1173_v14  ;;  %v1648_v28 = vpop.f32.mrb[30].mxu0  ;;  %v1684_v53 = vpop.f32.mrb[30].mxu1 }
 0x140   : > { %1382 = vst.msk [vmem:[%s2068_s14 + $0x20] sm:$0xf] %vm1373_vm3, %v1565_v27  ;;  %v1566_v29 = vpack.c.bf16 %v1292_v21, %v1292_v21  ;;  %v1252_v54 = vmax.f32 %v1216_v24, %v1234_v25  ;;  %v1217_v40 = vmax.f32 %v2046_v44, %v1648_v28  ;;  %v1235_v41 = vmax.f32 %v2048_v45, %v1684_v53  ;;  %v1032_v55 = vpop.f32.mrb[31].mxu0  ;;  %v1176_v18 = vpop.f32.mrb[31].mxu1 }
 0x141   : > { %1380 = vst.msk [vmem:[%s2068_s14 + $0x18] sm:$0xf] %vm1373_vm3, %v1563_v15  ;;  %v1564_v56 = vpack.c.bf16 %v1290_v47, %v1290_v47  ;;  %v1250_v30 = vmax.f32 %v1214_v48, %v1232_v49  ;;  %v1215_v19 = vmax.f32 %v2024_v34, %v1032_v55  ;;  %v1233_v31 = vmax.f32 %v2026_v35, %v1176_v18 }
 0x142   : > { %1383 = vst.msk [vmem:[%s2068_s14 + $0x24] sm:$0xf] %vm1373_vm3, %v1566_v29  ;;  %v1277_v57 = vadd.f32 %v2057_v52, %v1252_v54  ;;  %v1253_v60 = vmax.f32 %v1217_v40, %v1235_v41 }
 0x143   : > { %1381 = vst.msk [vmem:[%s2068_s14 + $0x1c] sm:$0xf] %vm1373_vm3, %v1564_v56  ;;  %v1275_v44 = vadd.f32 %v2057_v52, %v1250_v30  ;;  %v1251_v45 = vmax.f32 %v1215_v19, %v1233_v31 }
 0x144   : > { %v1295_v61 = vmax.f32 %v1277_v57, 0.0  ;;  %v1278_v62 = vadd.f32 %v2057_v52, %v1253_v60 }
 0x145   : > { %v1293_v63 = vmax.f32 %v1275_v44, 0.0  ;;  %v1276_v0 = vadd.f32 %v2057_v52, %v1251_v45  ;;  %v1651_v34 = vpop.f32.mrb[32].mxu0  ;;  %v1687_v1 = vpop.f32.mrb[32].mxu1 }
 0x146   : > { %v1569_v35 = vpack.c.bf16 %v1295_v61, %v1295_v61  ;;  %v1296_v2 = vmax.f32 %v1278_v62, 0.0  ;;  %v1220_v3 = vmax.f32 %v2050_v50, %v1651_v34  ;;  %v1238_v4 = vmax.f32 %v2052_v51, %v1687_v1  ;;  %v1045_v5 = vpop.f32.mrb[33].mxu0  ;;  %v1189_v32 = vpop.f32.mrb[33].mxu1 }
 0x147   : > { %v1567_v33 = vpack.c.bf16 %v1293_v63, %v1293_v63  ;;  %v1294_v6 = vmax.f32 %v1276_v0, 0.0  ;;  %v1218_v7 = vmax.f32 %v2032_v38, %v1045_v5  ;;  %v1236_v8 = vmax.f32 %v2034_v39, %v1189_v32  ;;  %v1652_v22 = vpop.f32.mrb[34].mxu0  ;;  %v1688_v9 = vpop.f32.mrb[34].mxu1 }
 0x148   : > { %1386 = vst.msk [vmem:[%s2068_s14 + $0x30] sm:$0xf] %vm1373_vm3, %v1569_v35  ;;  %v1570_v23 = vpack.c.bf16 %v1296_v2, %v1296_v2  ;;  %v1256_v10 = vmax.f32 %v1220_v3, %v1238_v4  ;;  %v1221_v50 = vmax.f32 %v2059_v58, %v1652_v22  ;;  %v1239_v51 = vmax.f32 %v2061_v59, %v1688_v9  ;;  %v1048_v11 = vpop.f32.mrb[35].mxu0  ;;  %v1192_v36 = vpop.f32.mrb[35].mxu1 }
 0x149   : > { %1384 = vst.msk [vmem:[%s2068_s14 + $0x28] sm:$0xf] %vm1373_vm3, %v1567_v33  ;;  %v1568_v37 = vpack.c.bf16 %v1294_v6, %v1294_v6  ;;  %v1254_v38 = vmax.f32 %v1218_v7, %v1236_v8  ;;  %v1219_v12 = vmax.f32 %v2042_v42, %v1048_v11  ;;  %v1237_v39 = vmax.f32 %v2044_v43, %v1192_v36 }
 0x14a   : > { %1387 = vst.msk [vmem:[%s2068_s14 + $0x34] sm:$0xf] %vm1373_vm3, %v1570_v23  ;;  %v1281_v13 = vadd.f32 %v2057_v52, %v1256_v10  ;;  %v1257_v16 = vmax.f32 %v1221_v50, %v1239_v51 }
 0x14b   : > { %1385 = vst.msk [vmem:[%s2068_s14 + $0x2c] sm:$0xf] %vm1373_vm3, %v1568_v37  ;;  %v1279_v58 = vadd.f32 %v2057_v52, %v1254_v38  ;;  %v1255_v59 = vmax.f32 %v1219_v12, %v1237_v39 }
 0x14c   : > { %v1299_v17 = vmax.f32 %v1281_v13, 0.0  ;;  %v1282_v26 = vadd.f32 %v2057_v52, %v1257_v16 }
 0x14d   : > { %v1297_v42 = vmax.f32 %v1279_v58, 0.0  ;;  %v1280_v20 = vadd.f32 %v2057_v52, %v1255_v59 }
 0x14e   : > { %v1573_v43 = vpack.c.bf16 %v1299_v17, %v1299_v17  ;;  %v1300_v27 = vmax.f32 %v1282_v26, 0.0 }
 0x14f   : > { %v1571_v21 = vpack.c.bf16 %v1297_v42, %v1297_v42  ;;  %v1298_v24 = vmax.f32 %v1280_v20, 0.0 }
 0x150   : > { %1390 = vst.msk [vmem:[%s2068_s14 + $0x40] sm:$0xf] %vm1373_vm3, %v1573_v43  ;;  %v1574_v25 = vpack.c.bf16 %v1300_v27, %v1300_v27 }
 0x151   : > { %1388 = vst.msk [vmem:[%s2068_s14 + $0x38] sm:$0xf] %vm1373_vm3, %v1571_v21  ;;  %v1572_v46 = vpack.c.bf16 %v1298_v24, %v1298_v24 }
 0x152   : > { %1391 = vst.msk [vmem:[%s2068_s14 + $0x44] sm:$0xf] %vm1373_vm3, %v1574_v25 }
 0x153   : > { %1389 = vst.msk [vmem:[%s2068_s14 + $0x3c] sm:$0xf] %vm1373_vm3, %v1572_v46 }
 0x154 PF: > { %p10_p9 = scmp.ge.s32.totalorder %s1820_s16, 4   ;;  %s2166_s12 = smov %s1776_s13 }
 0x155   : > { %s2167_s13 = smov %s1829_s19  ;;  %s2168_s14 = smov %s1820_s16 }
 0x156   :  { %12 = sbr.rel (!%p10_p9) target bundleno = 2 (0x2), region = 108 }

// kernel: cnn_forward.4
= control target key start
LH: loop header
LB: loop body
LE: loop exit
PB: predicated region body
PF: predicated region fallthrough
CT: control target
= control target key end

     0   :  { %s841_s12 = smov 0   ;;  %s843_s13 = smov 0   ;;  %s971_s0 = inlined_call_operand.vmem [shape: bf16[4,64,144], index: 0, kind: input, shape index: {}]   ;;  %s972_s1 = inlined_call_operand.vmem [shape: bf16[144,32], index: 1, kind: input, shape index: {}]   ;;  %s973_s2 = inlined_call_operand.vmem [shape: f32[1,32], index: 2, kind: input, shape index: {}]   ;;  %s974_s3 = inlined_call_operand.vmem [shape: bf16[64,32], index: 3, kind: output, shape index: {}]  }
   0x1   :  { %s845_s14 = smov 0  }
   0x2 LB: > { %s662_s15 = sadd.s32 4294967295, %s818_s14   ;;  %s858_s16 = sadd.s32 1, %s818_s14   ;;  %s818_s14 = sphi %s845_s14, %s977_s14   ;;  %s814_s13 = sphi %s843_s13, %s976_s13   ;;  %s810_s12 = sphi %s841_s12, %s975_s12  }
   0x3   : > { %s17_s17 = ssub.s32 %s818_s14, %s858_s16  ;;  %s20_s18 = sadd.s32 1, %s814_s13 }
   0x4   : > { %p18_p0 = scmp.eq.s32.totalorder %s17_s17, 0  ;;  %p27_p1 = scmp.ne.s32.totalorder %s814_s13, %s810_s12 }
   0x5   : > { %p28_p2 = scmp.eq.s32.totalorder %s818_s14, 0  ;;  %p665_p4 = scmp.ge.s32.totalorder %s818_s14, 2 }
   0x6   : > { %s867_s19 = scalar_select %p18_p0, %s814_s13, %s20_s18  }
   0x7   : > { %p29_p3 = por %p28_p2, %p27_p1  ;;  %127 = sbr.rel (%p665_p4) target bundleno = 26 (0x1a), region = 24 }
   0xe   : > { %130 = sbr.rel (!%p29_p3) target bundleno = 26 (0x1a), region = 28  ;;  %s132_s20 = sand.u32 (%p29_p3), 1, %s814_s13  }
   0xf   : > { %s715_s21 = sshll.u32 (%p29_p3), %s818_s14, 5  ;;  %s666_s22 = sshll.u32 (%p29_p3), %s132_s20, 7 }
  0x10   : > { %s875_s25 = scalar_lea.vmem (%p29_p3), %s971_s0, %s715_s21  ;;  %s134_s26 = scalar_lea.vmem (%p29_p3), [#allocation2], %s666_s22 }
  0x11   : > { %v196_v0 = vld [vmem:[%s875_s25] sm:$0xff] (%p29_p3)  ;;  %v198_v1 = vld [vmem:[%s875_s25 + $0x8] sm:$0xff] (%p29_p3)  ;;  %v200_v2 = vld [vmem:[%s875_s25 + $0x10] sm:$0xff] (%p29_p3) }
  0x12   : > { %197 = vst [vmem:[%s134_s26] sm:$0xff] (%p29_p3), %v196_v0  ;;  %199 = vst [vmem:[%s134_s26 + $0x8] sm:$0xff] (%p29_p3), %v198_v1  ;;  %v202_v3 = vld [vmem:[%s875_s25 + $0x18] sm:$0xff] (%p29_p3)  ;;  %v204_v4 = vld [vmem:[%s875_s25 + $0x40] sm:$0xff] (%p29_p3) }
  0x13   : > { %201 = vst [vmem:[%s134_s26 + $0x10] sm:$0xff] (%p29_p3), %v200_v2  ;;  %v206_v5 = vld [vmem:[%s875_s25 + $0x48] sm:$0xff] (%p29_p3)  ;;  %203 = vst [vmem:[%s134_s26 + $0x18] sm:$0xff] (%p29_p3), %v202_v3  ;;  %v208_v6 = vld [vmem:[%s875_s25 + $0x50] sm:$0xff] (%p29_p3) }
  0x14   : > { %205 = vst [vmem:[%s134_s26 + $0x20] sm:$0xff] (%p29_p3), %v204_v4  ;;  %207 = vst [vmem:[%s134_s26 + $0x28] sm:$0xff] (%p29_p3), %v206_v5  ;;  %v210_v7 = vld [vmem:[%s875_s25 + $0x58] sm:$0xff] (%p29_p3)  ;;  %v212_v8 = vld [vmem:[%s875_s25 + $0x80] sm:$0xff] (%p29_p3) }
  0x15   : > { %209 = vst [vmem:[%s134_s26 + $0x30] sm:$0xff] %v208_v6  ;;  %211 = vst [vmem:[%s134_s26 + $0x38] sm:$0xff] %v210_v7  ;;  %v214_v9 = vld [vmem:[%s875_s25 + $0x88] sm:$0xff]  ;;  %v216_v10 = vld [vmem:[%s875_s25 + $0x90] sm:$0xff] }
  0x16   : > { %213 = vst [vmem:[%s134_s26 + $0x40] sm:$0xff] %v212_v8  ;;  %v218_v11 = vld [vmem:[%s875_s25 + $0x98] sm:$0xff]  ;;  %215 = vst [vmem:[%s134_s26 + $0x48] sm:$0xff] %v214_v9  ;;  %v220_v12 = vld [vmem:[%s875_s25 + $0xc0] sm:$0xff] }
  0x17   : > { %217 = vst [vmem:[%s134_s26 + $0x50] sm:$0xff] %v216_v10  ;;  %219 = vst [vmem:[%s134_s26 + $0x58] sm:$0xff] %v218_v11  ;;  %v222_v13 = vld [vmem:[%s875_s25 + $0xc8] sm:$0xff]  ;;  %v224_v14 = vld [vmem:[%s875_s25 + $0xd0] sm:$0xff] }
  0x18   : > { %221 = vst [vmem:[%s134_s26 + $0x60] sm:$0xff] %v220_v12  ;;  %223 = vst [vmem:[%s134_s26 + $0x68] sm:$0xff] %v222_v13  ;;  %v226_v15 = vld [vmem:[%s875_s25 + $0xd8] sm:$0xff] }
  0x19   : > { %225 = vst [vmem:[%s134_s26 + $0x70] sm:$0xff] %v224_v14  ;;  %227 = vst [vmem:[%s134_s26 + $0x78] sm:$0xff] %v226_v15 }
  0x1a PF: > { %p670_p5 = scmp.ge.s32.totalorder %s818_s14, 1  ;;  %p232_p6 = scmp.lt.s32.totalorder %s818_s14, 3 }
  0x1c   : > { %p233_p7 = pnand %p670_p5, %p232_p6 }
  0x1d   : > { %v763_v16 = vld [vmem:[%s972_s1] sm:$0xff] (!%p233_p7)   ;;  %v820_v17 = vmov (!%p233_p7), 0   ;;  %s239_s29 = sand.u32 (!%p233_p7), 1, %s810_s12   ;;  %v764_v18 = vld [vmem:[%s972_s1 + $0x8] sm:$0xff] (!%p233_p7)   ;;  %v765_v19 = vld [vmem:[%s972_s1 + $0x10] sm:$0xff] (!%p233_p7)   ;;  %vm430_vm0 = vcmask (!%p233_p7), 130048  }
  0x1e   : > { %236 = sbr.rel (%p233_p7) target bundleno = 315 (0x13b), region = 66  ;;  %455 = vmatprep.subr.bf16.mxu0 (!%p233_p7), %v820_v17  ;;  %720 = vmatprep.subr.bf16.mxu1 (!%p233_p7), %v820_v17  ;;  %s671_s5 = sshll.u32 (!%p233_p7), %s239_s29, 7  ;;  %v766_v20 = vld [vmem:[%s972_s1 + $0x18] sm:$0xff] (!%p233_p7)   ;;  %v767_v23 = vld [vmem:[%s972_s1 + $0x20] sm:$0xff] (!%p233_p7)   ;;  %v768_v24 = vld [vmem:[%s972_s1 + $0x28] sm:$0xff] (!%p233_p7)   ;;  %vm595_vm1 = vcmask (!%p233_p7), 257024  }
  0x1f   : > { %456 = vmatpush1.bf16.msra.mxu0 (!%p233_p7), %v763_v16  ;;  %729 = vmatpush1.bf16.msra.mxu1 (!%p233_p7), %v763_v16  ;;  %s908_s10 = scalar_lea.vmem (!%p233_p7), [#allocation2], %s671_s5  ;;  %v769_v25 = vld [vmem:[%s972_s1 + $0x30] sm:$0xff] (!%p233_p7)   ;;  %v770_v26 = vld [vmem:[%s972_s1 + $0x38] sm:$0xff] (!%p233_p7)   ;;  %v771_v27 = vld [vmem:[%s972_s1 + $0x40] sm:$0xff] (!%p233_p7)   ;;  %s672_s26 = sshll.u32 (!%p233_p7), %s662_s15, 2 }
  0x20   : > { %457 = vmatprep.subr.bf16.mxu0 (!%p233_p7), %v820_v17  ;;  %721 = vmatprep.subr.bf16.mxu1 (!%p233_p7), %v820_v17  ;;  %v774_v21 = vld [vmem:[%s908_s10 + $0x4] ss:$8 sps:$4 sm:$0xff] (!%p233_p7)   ;;  %v772_v28 = vld [vmem:[%s908_s10] ss:$8 sps:$4 sm:$0xff] (!%p233_p7)   ;;  %v778_v30 = vld [vmem:[%s908_s10 + $0x14] ss:$8 sps:$4 sm:$0xff] (!%p233_p7)  }
  0x21   : > { %v777_v22 = vld [vmem:[%s908_s10 + $0x44] ss:$8 sps:$4 sm:$0xff] (!%p233_p7)   ;;  %699 = vmatprep.mubr.msk.bf16.mxu0 (!%p233_p7), %vm430_vm0, %v774_v21  ;;  %v775_v29 = vld [vmem:[%s908_s10 + $0x40] ss:$8 sps:$4 sm:$0xff] (!%p233_p7)   ;;  %v780_v31 = vld [vmem:[%s908_s10 + $0x54] ss:$8 sps:$4 sm:$0xff] (!%p233_p7)  }
  0x22   : > { %703 = vmatprep.mubr.msk.bf16.mxu1 (!%p233_p7), %vm430_vm0, %v777_v22  ;;  %v782_v32 = vld [vmem:[%s908_s10 + $0x10] ss:$8 sps:$4 sm:$0xff] (!%p233_p7)   ;;  %v784_v34 = vld [vmem:[%s908_s10 + $0x24] ss:$8 sps:$4 sm:$0xff] (!%p233_p7)   ;;  %v788_v36 = vld [vmem:[%s908_s10 + $0x20] ss:$8 sps:$4 sm:$0xff] (!%p233_p7)  }
  0x23   : > { %458 = vmatpush1.bf16.msra.mxu0 (!%p233_p7), %v764_v18  ;;  %730 = vmatpush1.bf16.msra.mxu1 (!%p233_p7), %v764_v18  ;;  %v783_v33 = vld [vmem:[%s908_s10 + $0x50] ss:$8 sps:$4 sm:$0xff] (!%p233_p7)   ;;  %v786_v35 = vld [vmem:[%s908_s10 + $0x64] ss:$8 sps:$4 sm:$0xff] (!%p233_p7)   ;;  %v789_v37 = vld [vmem:[%s908_s10 + $0x60] ss:$8 sps:$4 sm:$0xff] (!%p233_p7)  }
  0x24   : > { %459 = vmatprep.subr.bf16.mxu0 (!%p233_p7), %v820_v17  ;;  %722 = vmatprep.subr.bf16.mxu1 (!%p233_p7), %v820_v17  ;;  %v790_v38 = vld [vmem:[%s908_s10 + $0x34] ss:$8 sps:$4 sm:$0xff] (!%p233_p7)   ;;  %v794_v40 = vld [vmem:[%s908_s10 + $0x30] ss:$8 sps:$4 sm:$0xff] (!%p233_p7)   ;;  %p264_p8 = scmp.lt.s32.totalorder (!%p233_p7), %s672_s26, 7 }
  0x25   : > { %v792_v39 = vld [vmem:[%s908_s10 + $0x74] ss:$8 sps:$4 sm:$0xff]   ;;  %v795_v41 = vld [vmem:[%s908_s10 + $0x70] ss:$8 sps:$4 sm:$0xff]   ;;  %v707_v0 = vld [vmem:[%s973_s2] ss:$0 sm:$0xff] }
  0x26   : > { %s979_s26 = smov (!%p264_p8, %s672_s26), 7 }
  0x27   : > { %460 = vmatpush1.bf16.msra.mxu0 %v765_v19  ;;  %731 = vmatpush1.bf16.msra.mxu1 %v765_v19  ;;  %s673_s14 = sshll.u32 %s979_s26, 2 }
  0x28   : > { %461 = vmatprep.subr.bf16.mxu0 %v820_v17  ;;  %723 = vmatprep.subr.bf16.mxu1 %v820_v17  ;;  %s267_s30 = scalar_lea.vmem %s974_s3, %s673_s14 }
  0x2b   : > { %462 = vmatpush1.bf16.msra.mxu0 %v766_v20  ;;  %732 = vmatpush1.bf16.msra.mxu1 %v766_v20 }
  0x2c   : > { %463 = vmatprep.subr.bf16.mxu0 %v820_v17  ;;  %724 = vmatprep.subr.bf16.mxu1 %v820_v17 }
  0x2f   : > { %464 = vmatpush1.bf16.msra.mxu0 %v767_v23  ;;  %733 = vmatpush1.bf16.msra.mxu1 %v767_v23 }
  0x30   : > { %465 = vmatprep.subr.bf16.mxu0 %v820_v17  ;;  %725 = vmatprep.subr.bf16.mxu1 %v820_v17 }
  0x33   : > { %466 = vmatpush1.bf16.msra.mxu0 %v768_v24  ;;  %734 = vmatpush1.bf16.msra.mxu1 %v768_v24 }
  0x34   : > { %467 = vmatprep.subr.bf16.mxu0 %v820_v17  ;;  %726 = vmatprep.subr.bf16.mxu1 %v820_v17 }
  0x37   : > { %468 = vmatpush1.bf16.msra.mxu0 %v769_v25  ;;  %735 = vmatpush1.bf16.msra.mxu1 %v769_v25 }
  0x38   : > { %469 = vmatprep.subr.bf16.mxu0 %v820_v17  ;;  %727 = vmatprep.subr.bf16.mxu1 %v820_v17 }
  0x3b   : > { %470 = vmatpush1.bf16.msra.mxu0 %v770_v26  ;;  %736 = vmatpush1.bf16.msra.mxu1 %v770_v26 }
  0x3c   : > { %471 = vmatprep.subr.bf16.mxu0 %v820_v17  ;;  %728 = vmatprep.subr.bf16.mxu1 %v820_v17 }
  0x3f   : > { %472 = vmatpush1.bf16.msra.mxu0 %v771_v27  ;;  %737 = vmatpush1.bf16.msra.mxu1 %v771_v27 }
  0x42   : > { %488 = vmatmul.mubr.bf16.vlgmr.msra.gmra.mrb[0].mxu0 %v772_v28  ;;  %520 = vmatmul.mubr.bf16.vlgmr.msra.gmra.mrb[0].mxu1 %v775_v29 }
  0x43   : > { %700 = vmatprep.mubr.msk.bf16.mxu0 %vm430_vm0, %v778_v30  ;;  %704 = vmatprep.mubr.msk.bf16.mxu1 %vm430_vm0, %v780_v31 }
  0x4a   : > { %496 = vmatmul.mubr.bf16.gmra.mrb[4].mxu0 %v782_v32  ;;  %528 = vmatmul.mubr.bf16.gmra.mrb[4].mxu1 %v783_v33 }
  0x4b   : > { %701 = vmatprep.mubr.msk.bf16.mxu0 %vm430_vm0, %v784_v34  ;;  %705 = vmatprep.mubr.msk.bf16.mxu1 %vm430_vm0, %v786_v35 }
  0x52   : > { %504 = vmatmul.mubr.bf16.gmra.mrb[8].mxu0 %v788_v36  ;;  %536 = vmatmul.mubr.bf16.gmra.mrb[8].mxu1 %v789_v37 }
  0x53   : > { %702 = vmatprep.mubr.msk.bf16.mxu0 %vm430_vm0, %v790_v38  ;;  %706 = vmatprep.mubr.msk.bf16.mxu1 %vm430_vm0, %v792_v39 }
  0x5a   : > { %512 = vmatmul.mubr.bf16.gmra.mrb[12].mxu0 %v794_v40  ;;  %544 = vmatmul.mubr.bf16.gmra.mrb[12].mxu1 %v795_v41 }
 0x115   : > { %v489_v42 = vpop.f32.mrb[0].mxu0  ;;  %v521_v43 = vpop.f32.mrb[0].mxu1 }
 0x116   : > { %v491_v44 = vpop.f32.mrb[1].mxu0  ;;  %v523_v45 = vpop.f32.mrb[1].mxu1 }
 0x117   : > { %v492_v46 = vpop.f32.mrb[2].mxu0  ;;  %v524_v47 = vpop.f32.mrb[2].mxu1 }
 0x118   : > { %v494_v48 = vpop.f32.mrb[3].mxu0  ;;  %v526_v49 = vpop.f32.mrb[3].mxu1 }
 0x11d   : > { %v497_v50 = vpop.f32.mrb[4].mxu0  ;;  %v529_v51 = vpop.f32.mrb[4].mxu1 }
 0x11e   : > { %v499_v52 = vpop.f32.mrb[5].mxu0  ;;  %v531_v53 = vpop.f32.mrb[5].mxu1 }
 0x11f   : > { %v500_v54 = vpop.f32.mrb[6].mxu0  ;;  %v532_v55 = vpop.f32.mrb[6].mxu1 }
 0x120   : > { %v502_v56 = vpop.f32.mrb[7].mxu0  ;;  %v534_v57 = vpop.f32.mrb[7].mxu1 }
 0x125   : > { %v505_v58 = vpop.f32.mrb[8].mxu0  ;;  %v537_v59 = vpop.f32.mrb[8].mxu1 }
 0x126   : > { %v552_v60 = vmax.f32 %v489_v42, %v505_v58  ;;  %v556_v61 = vmax.f32 %v521_v43, %v537_v59  ;;  %v507_v62 = vpop.f32.mrb[9].mxu0  ;;  %v539_v63 = vpop.f32.mrb[9].mxu1 }
 0x127   : > { %v508_v1 = vpop.f32.mrb[10].mxu0  ;;  %v540_v2 = vpop.f32.mrb[10].mxu1 }
 0x128   : > { %v560_v3 = vmax.f32 %v552_v60, %v556_v61  ;;  %v553_v4 = vmax.f32 %v492_v46, %v508_v1  ;;  %v557_v5 = vmax.f32 %v524_v47, %v540_v2  ;;  %v510_v6 = vpop.f32.mrb[11].mxu0  ;;  %v542_v7 = vpop.f32.mrb[11].mxu1 }
 0x12a   : > { %v571_v8 = vadd.f32 %v707_v0, %v560_v3  ;;  %v561_v9 = vmax.f32 %v553_v4, %v557_v5 }
 0x12c   : > { %v575_v10 = vmax.f32 %v571_v8, 0.0  ;;  %v572_v11 = vadd.f32 %v707_v0, %v561_v9 }
 0x12d   : > { %v513_v12 = vpop.f32.mrb[12].mxu0  ;;  %v545_v13 = vpop.f32.mrb[12].mxu1 }
 0x12e   : > { %v716_v14 = vpack.c.bf16 %v575_v10, %v575_v10  ;;  %v576_v15 = vmax.f32 %v572_v11, 0.0  ;;  %v554_v16 = vmax.f32 %v497_v50, %v513_v12  ;;  %v558_v17 = vmax.f32 %v529_v51, %v545_v13  ;;  %v515_v18 = vpop.f32.mrb[13].mxu0  ;;  %v547_v19 = vpop.f32.mrb[13].mxu1 }
 0x12f   : > { %v516_v20 = vpop.f32.mrb[14].mxu0  ;;  %v548_v21 = vpop.f32.mrb[14].mxu1 }
 0x130   : > { %596 = vst.msk [vmem:[%s267_s30] sm:$0xf] %vm595_vm1, %v716_v14  ;;  %v717_v22 = vpack.c.bf16 %v576_v15, %v576_v15  ;;  %v562_v23 = vmax.f32 %v554_v16, %v558_v17  ;;  %v555_v24 = vmax.f32 %v500_v54, %v516_v20  ;;  %v559_v25 = vmax.f32 %v532_v55, %v548_v21  ;;  %v518_v26 = vpop.f32.mrb[15].mxu0  ;;  %v550_v27 = vpop.f32.mrb[15].mxu1 }
 0x132   : > { %597 = vst.msk [vmem:[%s267_s30 + $0x4] sm:$0xf] %vm595_vm1, %v717_v22  ;;  %v573_v28 = vadd.f32 %v707_v0, %v562_v23  ;;  %v563_v29 = vmax.f32 %v555_v24, %v559_v25 }
 0x134   : > { %v577_v30 = vmax.f32 %v573_v28, 0.0  ;;  %v574_v31 = vadd.f32 %v707_v0, %v563_v29 }
 0x136   : > { %v718_v32 = vpack.c.bf16 %v577_v30, %v577_v30  ;;  %v578_v33 = vmax.f32 %v574_v31, 0.0 }
 0x138   : > { %598 = vst.msk [vmem:[%s267_s30 + $0x8] sm:$0xf] %vm595_vm1, %v718_v32  ;;  %v719_v34 = vpack.c.bf16 %v578_v33, %v578_v33 }
 0x13a   : > { %599 = vst.msk [vmem:[%s267_s30 + $0xc] sm:$0xf] %vm595_vm1, %v719_v34 }
 0x13b PF: > { %p10_p9 = scmp.ge.s32.totalorder %s858_s16, 4   ;;  %s975_s12 = smov %s814_s13 }
 0x13c   : > { %s976_s13 = smov %s867_s19  ;;  %s977_s14 = smov %s858_s16 }
 0x13d   :  { %12 = sbr.rel (!%p10_p9) target bundleno = 2 (0x2), region = 105 }

// kernel: cnn_forward.5
= control target key start
LH: loop header
LB: loop body
LE: loop exit
PB: predicated region body
PF: predicated region fallthrough
CT: control target
= control target key end

     0   :  { %vm676_vm0 = vcmask 261120   ;;  %s1788_s1 = inlined_call_operand.vmem [shape: bf16[800,256], index: 1, kind: input, shape index: {}]   ;;  %s1789_s0 = inlined_call_operand.vmem [shape: bf16[16,800], index: 0, kind: input, shape index: {}]   ;;  %s1790_s3 = inlined_call_operand.vmem [shape: bf16[256,128], index: 3, kind: input, shape index: {}]   ;;  %s1791_s2 = inlined_call_operand.vmem [shape: f32[1,256], index: 2, kind: input, shape index: {}]   ;;  %s1792_s4 = inlined_call_operand.vmem [shape: f32[1,128], index: 4, kind: input, shape index: {}]   ;;  %s1793_s5 = inlined_call_operand.vmem [shape: f32[16,128], index: 5, kind: output, shape index: {}]  }
   0x1   :  { %v1200_v0 = vld [vmem:[%s1788_s1 + $0x104] ss:$8 sps:$4 sm:$0xff]   ;;  %v1202_v1 = vld [vmem:[%s1788_s1 + $0x100] ss:$8 sps:$4 sm:$0xff]   ;;  %v1203_v2 = vld [vmem:[%s1788_s1 + $0x114] ss:$8 sps:$4 sm:$0xff]  }
   0x2   :  { %723 = vmatprep.subr.bf16.mxu0 %v1200_v0  ;;  %v1205_v3 = vld [vmem:[%s1788_s1 + $0x110] ss:$8 sps:$4 sm:$0xff]   ;;  %v1206_v4 = vld [vmem:[%s1788_s1 + $0x124] ss:$8 sps:$4 sm:$0xff]   ;;  %v1208_v5 = vld [vmem:[%s1788_s1 + $0x120] ss:$8 sps:$4 sm:$0xff]  }
   0x3   :  { %724 = vmatpush1.bf16.msra.mxu0 %v1202_v1  ;;  %v1209_v6 = vld [vmem:[%s1788_s1 + $0x134] ss:$8 sps:$4 sm:$0xff]   ;;  %v1211_v7 = vld [vmem:[%s1788_s1 + $0x130] ss:$8 sps:$4 sm:$0xff]   ;;  %v1212_v8 = vld [vmem:[%s1788_s1 + $0x144] ss:$8 sps:$4 sm:$0xff]  }
   0x4   :  { %725 = vmatprep.subr.bf16.mxu0 %v1203_v2  ;;  %v1214_v9 = vld [vmem:[%s1788_s1 + $0x140] ss:$8 sps:$4 sm:$0xff]   ;;  %v1215_v10 = vld [vmem:[%s1788_s1 + $0x154] ss:$8 sps:$4 sm:$0xff]   ;;  %v1217_v11 = vld [vmem:[%s1788_s1 + $0x150] ss:$8 sps:$4 sm:$0xff]  }
   0x5   :  { %v1242_v12 = vld [vmem:[%s1788_s1 + $0x4] ss:$8 sps:$4 sm:$0xff]   ;;  %v1244_v13 = vld [vmem:[%s1788_s1] ss:$8 sps:$4 sm:$0xff]   ;;  %v1248_v15 = vld [vmem:[%s1788_s1 + $0x14] ss:$8 sps:$4 sm:$0xff]  }
   0x6   :  { %v1218_v14 = vld [vmem:[%s1788_s1 + $0x164] ss:$8 sps:$4 sm:$0xff]   ;;  %680 = vmatprep.subr.bf16.mxu1 %v1242_v12  ;;  %v1250_v16 = vld [vmem:[%s1788_s1 + $0x10] ss:$8 sps:$4 sm:$0xff]   ;;  %v1220_v17 = vld [vmem:[%s1788_s1 + $0x160] ss:$8 sps:$4 sm:$0xff]  }
   0x7   :  { %726 = vmatpush1.bf16.msra.mxu0 %v1205_v3  ;;  %681 = vmatpush1.bf16.msra.mxu1 %v1244_v13  ;;  %v1221_v18 = vld [vmem:[%s1788_s1 + $0x174] ss:$8 sps:$4 sm:$0xff]   ;;  %v1254_v19 = vld [vmem:[%s1788_s1 + $0x24] ss:$8 sps:$4 sm:$0xff]   ;;  %v1256_v20 = vld [vmem:[%s1788_s1 + $0x20] ss:$8 sps:$4 sm:$0xff]  }
   0x8   :  { %727 = vmatprep.subr.bf16.mxu0 %v1206_v4  ;;  %682 = vmatprep.subr.bf16.mxu1 %v1248_v15  ;;  %v1259_v21 = vld [vmem:[%s1789_s0 + $0xc] ss:$28 sps:$4 sm:$0xff]   ;;  %v1223_v22 = vld [vmem:[%s1788_s1 + $0x170] ss:$8 sps:$4 sm:$0xff]   ;;  %v1263_v24 = vld [vmem:[%s1788_s1 + $0x34] ss:$8 sps:$4 sm:$0xff]  }
   0x9   :  { %v1224_v23 = vld [vmem:[%s1788_s1 + $0x184] ss:$8 sps:$4 sm:$0xff]   ;;  %755 = vmatprep.mubr.bf16.mxu0 %v1259_v21  ;;  %v1265_v25 = vld [vmem:[%s1788_s1 + $0x30] ss:$8 sps:$4 sm:$0xff]   ;;  %v1226_v26 = vld [vmem:[%s1788_s1 + $0x180] ss:$8 sps:$4 sm:$0xff]  }
   0xa   :  { %v1269_v27 = vld [vmem:[%s1788_s1 + $0x44] ss:$8 sps:$4 sm:$0xff]   ;;  %v1227_v28 = vld [vmem:[%s1788_s1 + $0x194] ss:$8 sps:$4 sm:$0xff]   ;;  %v1271_v29 = vld [vmem:[%s1788_s1 + $0x40] ss:$8 sps:$4 sm:$0xff]  }
   0xb   :  { %728 = vmatpush1.bf16.msra.mxu0 %v1208_v5  ;;  %683 = vmatpush1.bf16.msra.mxu1 %v1250_v16  ;;  %v1229_v30 = vld [vmem:[%s1788_s1 + $0x190] ss:$8 sps:$4 sm:$0xff]   ;;  %v1275_v31 = vld [vmem:[%s1788_s1 + $0x54] ss:$8 sps:$4 sm:$0xff]   ;;  %v1230_v32 = vld [vmem:[%s1788_s1 + $0x1a4] ss:$8 sps:$4 sm:$0xff]  }
   0xc   :  { %729 = vmatprep.subr.bf16.mxu0 %v1209_v6  ;;  %684 = vmatprep.subr.bf16.mxu1 %v1254_v19  ;;  %v1277_v33 = vld [vmem:[%s1788_s1 + $0x50] ss:$8 sps:$4 sm:$0xff]   ;;  %v1232_v34 = vld [vmem:[%s1788_s1 + $0x1a0] ss:$8 sps:$4 sm:$0xff]   ;;  %v1281_v35 = vld [vmem:[%s1788_s1 + $0x64] ss:$8 sps:$4 sm:$0xff]  }
   0xd   :  { %v1233_v36 = vld [vmem:[%s1788_s1 + $0x1b4] ss:$8 sps:$4 sm:$0xff]   ;;  %v1283_v37 = vld [vmem:[%s1788_s1 + $0x60] ss:$8 sps:$4 sm:$0xff]   ;;  %v1235_v38 = vld [vmem:[%s1788_s1 + $0x1b0] ss:$8 sps:$4 sm:$0xff]  }
   0xe   :  { %v1287_v39 = vld [vmem:[%s1788_s1 + $0x74] ss:$8 sps:$4 sm:$0xff]   ;;  %v1236_v40 = vld [vmem:[%s1788_s1 + $0x1c4] ss:$8 sps:$4 sm:$0xff]   ;;  %v1289_v41 = vld [vmem:[%s1788_s1 + $0x70] ss:$8 sps:$4 sm:$0xff]  }
   0xf   :  { %730 = vmatpush1.bf16.msra.mxu0 %v1211_v7  ;;  %685 = vmatpush1.bf16.msra.mxu1 %v1256_v20  ;;  %v1238_v42 = vld [vmem:[%s1788_s1 + $0x1c0] ss:$8 sps:$4 sm:$0xff]   ;;  %v1293_v43 = vld [vmem:[%s1788_s1 + $0x84] ss:$8 sps:$4 sm:$0xff]   ;;  %v1239_v44 = vld [vmem:[%s1788_s1 + $0x1d4] ss:$8 sps:$4 sm:$0xff]  }
  0x10   :  { %731 = vmatprep.subr.bf16.mxu0 %v1212_v8  ;;  %686 = vmatprep.subr.bf16.mxu1 %v1263_v24  ;;  %v1295_v45 = vld [vmem:[%s1788_s1 + $0x80] ss:$8 sps:$4 sm:$0xff]   ;;  %v1241_v46 = vld [vmem:[%s1788_s1 + $0x1d0] ss:$8 sps:$4 sm:$0xff]   ;;  %v1299_v47 = vld [vmem:[%s1788_s1 + $0x94] ss:$8 sps:$4 sm:$0xff]  }
  0x11   :  { %v1245_v48 = vld [vmem:[%s1788_s1 + $0x1e4] ss:$8 sps:$4 sm:$0xff]   ;;  %v1301_v49 = vld [vmem:[%s1788_s1 + $0x90] ss:$8 sps:$4 sm:$0xff]   ;;  %v1247_v50 = vld [vmem:[%s1788_s1 + $0x1e0] ss:$8 sps:$4 sm:$0xff]  }
  0x12   :  { %v1305_v51 = vld [vmem:[%s1788_s1 + $0xa4] ss:$8 sps:$4 sm:$0xff]   ;;  %v1251_v52 = vld [vmem:[%s1788_s1 + $0x1f4] ss:$8 sps:$4 sm:$0xff]   ;;  %v1307_v53 = vld [vmem:[%s1788_s1 + $0xa0] ss:$8 sps:$4 sm:$0xff]  }
  0x13   :  { %732 = vmatpush1.bf16.msra.mxu0 %v1214_v9  ;;  %687 = vmatpush1.bf16.msra.mxu1 %v1265_v25  ;;  %v1253_v54 = vld [vmem:[%s1788_s1 + $0x1f0] ss:$8 sps:$4 sm:$0xff]   ;;  %v1311_v55 = vld [vmem:[%s1788_s1 + $0xb4] ss:$8 sps:$4 sm:$0xff]   ;;  %v1262_v56 = vld [vmem:[%s1788_s1 + $0x204] ss:$8 sps:$4 sm:$0xff]  }
  0x14   :  { %733 = vmatprep.subr.bf16.mxu0 %v1215_v10  ;;  %688 = vmatprep.subr.bf16.mxu1 %v1269_v27  ;;  %v1257_v57 = vld [vmem:[%s1789_s0 + $0x8] ss:$28 sps:$4 sm:$0xff]   ;;  %v1313_v59 = vld [vmem:[%s1788_s1 + $0xb0] ss:$8 sps:$4 sm:$0xff]   ;;  %v1268_v62 = vld [vmem:[%s1788_s1 + $0x214] ss:$8 sps:$4 sm:$0xff]  }
  0x15   :  { %v1260_v58 = vld [vmem:[%s1788_s1 + $0x200] ss:$8 sps:$4 sm:$0xff]   ;;  %v1317_v60 = vld [vmem:[%s1788_s1 + $0xc4] ss:$8 sps:$4 sm:$0xff]   ;;  %v1266_v0 = vld [vmem:[%s1788_s1 + $0x210] ss:$8 sps:$4 sm:$0xff]  }
  0x16   :  { %v1343_v61 = vld [vmem:[%s1789_s0 + $0x4] ss:$28 sps:$4 sm:$0xff]   ;;  %v1323_v1 = vld [vmem:[%s1788_s1 + $0xd4] ss:$8 sps:$4 sm:$0xff]   ;;  %v1325_v4 = vld [vmem:[%s1788_s1 + $0xd0] ss:$8 sps:$4 sm:$0xff]  }
  0x17   :  { %734 = vmatpush1.bf16.msra.mxu0 %v1217_v11  ;;  %689 = vmatpush1.bf16.msra.mxu1 %v1271_v29  ;;  %v1319_v63 = vld [vmem:[%s1788_s1 + $0xc0] ss:$8 sps:$4 sm:$0xff]   ;;  %v1274_v2 = vld [vmem:[%s1788_s1 + $0x224] ss:$8 sps:$4 sm:$0xff]   ;;  %v1358_v5 = vld [vmem:[%s1789_s0 + $0x14] ss:$28 sps:$4 sm:$0xff]  }
  0x18   :  { %735 = vmatprep.subr.bf16.mxu0 %v1218_v14  ;;  %690 = vmatprep.subr.bf16.mxu1 %v1275_v31  ;;  %v1272_v3 = vld [vmem:[%s1788_s1 + $0x220] ss:$8 sps:$4 sm:$0xff]   ;;  %v1329_v6 = vld [vmem:[%s1788_s1 + $0xe4] ss:$8 sps:$4 sm:$0xff]   ;;  %v1280_v7 = vld [vmem:[%s1788_s1 + $0x234] ss:$8 sps:$4 sm:$0xff]  }
  0x19   :  { %712 = vmatprep.mubr.bf16.mxu1 %v1343_v61  ;;  %v1278_v8 = vld [vmem:[%s1788_s1 + $0x230] ss:$8 sps:$4 sm:$0xff]   ;;  %v1331_v9 = vld [vmem:[%s1788_s1 + $0xe0] ss:$8 sps:$4 sm:$0xff]   ;;  %v1335_v10 = vld [vmem:[%s1788_s1 + $0xf4] ss:$8 sps:$4 sm:$0xff]  }
  0x1a   :  { %v1286_v11 = vld [vmem:[%s1788_s1 + $0x244] ss:$8 sps:$4 sm:$0xff]   ;;  %v1284_v12 = vld [vmem:[%s1788_s1 + $0x240] ss:$8 sps:$4 sm:$0xff]   ;;  %v1337_v13 = vld [vmem:[%s1788_s1 + $0xf0] ss:$8 sps:$4 sm:$0xff]  }
  0x1b   :  { %736 = vmatpush1.bf16.msra.mxu0 %v1220_v17  ;;  %691 = vmatpush1.bf16.msra.mxu1 %v1277_v33  ;;  %v1346_v14 = vld [vmem:[%s1788_s1 + $0x304] ss:$8 sps:$4 sm:$0xff]   ;;  %v1292_v15 = vld [vmem:[%s1788_s1 + $0x254] ss:$8 sps:$4 sm:$0xff]   ;;  %v1344_v17 = vld [vmem:[%s1788_s1 + $0x300] ss:$8 sps:$4 sm:$0xff]  }
  0x1c   :  { %737 = vmatprep.subr.bf16.mxu0 %v1221_v18  ;;  %692 = vmatprep.subr.bf16.mxu1 %v1281_v35  ;;  %v1341_v16 = vld [vmem:[%s1789_s0] ss:$28 sps:$4 sm:$0xff]   ;;  %v1290_v18 = vld [vmem:[%s1788_s1 + $0x250] ss:$8 sps:$4 sm:$0xff]   ;;  %v1298_v20 = vld [vmem:[%s1788_s1 + $0x264] ss:$8 sps:$4 sm:$0xff]  }
  0x1d   :  { %v1352_v19 = vld [vmem:[%s1788_s1 + $0x314] ss:$8 sps:$4 sm:$0xff]   ;;  %v1350_v21 = vld [vmem:[%s1788_s1 + $0x310] ss:$8 sps:$4 sm:$0xff]   ;;  %v1360_v24 = vld [vmem:[%s1790_s3 + $0x40] sm:$0xff]  }
  0x1e   :  { %v1304_v25 = vld [vmem:[%s1788_s1 + $0x274] ss:$8 sps:$4 sm:$0xff]   ;;  %v1361_v27 = vld [vmem:[%s1790_s3] sm:$0xff]   ;;  %v1362_v29 = vld [vmem:[%s1790_s3 + $0x48] sm:$0xff]  }
  0x1f   :  { %738 = vmatpush1.bf16.msra.mxu0 %v1223_v22  ;;  %693 = vmatpush1.bf16.msra.mxu1 %v1283_v37  ;;  %v1376_v22 = vmov 0   ;;  %v1363_v31 = vld [vmem:[%s1790_s3 + $0x8] sm:$0xff]   ;;  %v1364_v33 = vld [vmem:[%s1790_s3 + $0x50] sm:$0xff]  }
  0x20   :  { %739 = vmatprep.subr.bf16.mxu0 %v1224_v23  ;;  %694 = vmatprep.subr.bf16.mxu1 %v1287_v39  ;;  %v1296_v23 = vld [vmem:[%s1788_s1 + $0x260] ss:$8 sps:$4 sm:$0xff]   ;;  %v1365_v35 = vld [vmem:[%s1790_s3 + $0x10] sm:$0xff]   ;;  %v1322_v37 = vld [vmem:[%s1788_s1 + $0x2a4] ss:$8 sps:$4 sm:$0xff]  }
  0x21   :  { %v1328_v39 = vld [vmem:[%s1788_s1 + $0x2b4] ss:$8 sps:$4 sm:$0xff]  }
  0x23   :  { %740 = vmatpush1.bf16.msra.mxu0 %v1226_v26  ;;  %695 = vmatpush1.bf16.msra.mxu1 %v1289_v41  ;;  %v1359_v26 = vld [vmem:[%s1789_s0 + $0x18] ss:$28 sps:$4 sm:$0xff]   ;;  %v1334_v41 = vld [vmem:[%s1788_s1 + $0x2c4] ss:$8 sps:$4 sm:$0xff]  }
  0x24   :  { %741 = vmatprep.subr.bf16.mxu0 %v1227_v28  ;;  %696 = vmatprep.subr.bf16.mxu1 %v1293_v43  ;;  %v1302_v28 = vld [vmem:[%s1788_s1 + $0x270] ss:$8 sps:$4 sm:$0xff]   ;;  %v1340_v43 = vld [vmem:[%s1788_s1 + $0x2d4] ss:$8 sps:$4 sm:$0xff]  }
  0x27   :  { %742 = vmatpush1.bf16.msra.mxu0 %v1229_v30  ;;  %697 = vmatpush1.bf16.msra.mxu1 %v1295_v45  ;;  %v1310_v30 = vld [vmem:[%s1788_s1 + $0x284] ss:$8 sps:$4 sm:$0xff]  }
  0x28   :  { %743 = vmatprep.subr.bf16.mxu0 %v1230_v32  ;;  %698 = vmatprep.subr.bf16.mxu1 %v1299_v47  ;;  %v1308_v32 = vld [vmem:[%s1788_s1 + $0x280] ss:$8 sps:$4 sm:$0xff]   ;;  %v1349_v45 = vld [vmem:[%s1788_s1 + $0x2e4] ss:$8 sps:$4 sm:$0xff]   ;;  %v1355_v47 = vld [vmem:[%s1788_s1 + $0x2f4] ss:$8 sps:$4 sm:$0xff]  }
  0x2b   :  { %744 = vmatpush1.bf16.msra.mxu0 %v1232_v34  ;;  %699 = vmatpush1.bf16.msra.mxu1 %v1301_v49  ;;  %v1316_v34 = vld [vmem:[%s1788_s1 + $0x294] ss:$8 sps:$4 sm:$0xff]   ;;  %v1356_v49 = vld [vmem:[%s1789_s0 + $0x10] ss:$28 sps:$4 sm:$0xff]  }
  0x2c   :  { %745 = vmatprep.subr.bf16.mxu0 %v1233_v36  ;;  %700 = vmatprep.subr.bf16.mxu1 %v1305_v51  ;;  %v1314_v36 = vld [vmem:[%s1788_s1 + $0x290] ss:$8 sps:$4 sm:$0xff]  }
  0x2d   :  { %v1367_v51 = vld [vmem:[%s1790_s3 + $0x18] sm:$0xff]  }
  0x2f   :  { %746 = vmatpush1.bf16.msra.mxu0 %v1235_v38  ;;  %701 = vmatpush1.bf16.msra.mxu1 %v1307_v53  ;;  %v1320_v38 = vld [vmem:[%s1788_s1 + $0x2a0] ss:$8 sps:$4 sm:$0xff]  }
  0x30   :  { %747 = vmatprep.subr.bf16.mxu0 %v1236_v40  ;;  %702 = vmatprep.subr.bf16.mxu1 %v1311_v55  ;;  %v1326_v40 = vld [vmem:[%s1788_s1 + $0x2b0] ss:$8 sps:$4 sm:$0xff]   ;;  %v1369_v53 = vld [vmem:[%s1790_s3 + $0x20] sm:$0xff]   ;;  %v1371_v55 = vld [vmem:[%s1790_s3 + $0x28] sm:$0xff]  }
  0x33   :  { %748 = vmatpush1.bf16.msra.mxu0 %v1238_v42  ;;  %703 = vmatpush1.bf16.msra.mxu1 %v1313_v59  ;;  %v1332_v42 = vld [vmem:[%s1788_s1 + $0x2c0] ss:$8 sps:$4 sm:$0xff]   ;;  %v1375_v59 = vld [vmem:[%s1790_s3 + $0x38] sm:$0xff]  }
  0x34   :  { %749 = vmatprep.subr.bf16.mxu0 %v1239_v44  ;;  %704 = vmatprep.subr.bf16.mxu1 %v1317_v60  ;;  %v1338_v44 = vld [vmem:[%s1788_s1 + $0x2d0] ss:$8 sps:$4 sm:$0xff]  }
  0x37   :  { %750 = vmatpush1.bf16.msra.mxu0 %v1241_v46  ;;  %705 = vmatpush1.bf16.msra.mxu1 %v1319_v63  ;;  %v1347_v46 = vld [vmem:[%s1788_s1 + $0x2e0] ss:$8 sps:$4 sm:$0xff]  }
  0x38   :  { %751 = vmatprep.subr.bf16.mxu0 %v1245_v48  ;;  %706 = vmatprep.subr.bf16.mxu1 %v1323_v1  ;;  %v1353_v48 = vld [vmem:[%s1788_s1 + $0x2f0] ss:$8 sps:$4 sm:$0xff]  }
  0x3b   :  { %752 = vmatpush1.bf16.msra.mxu0 %v1247_v50  ;;  %707 = vmatpush1.bf16.msra.mxu1 %v1325_v4  ;;  %v1366_v50 = vld [vmem:[%s1790_s3 + $0x58] sm:$0xff]   ;;  %v131_v4 = vlaneseq }
  0x3c   :  { %753 = vmatprep.subr.bf16.mxu0 %v1251_v52  ;;  %708 = vmatprep.subr.bf16.mxu1 %v1329_v6  ;;  %v1368_v52 = vld [vmem:[%s1790_s3 + $0x60] sm:$0xff]  }
  0x3f   :  { %754 = vmatpush1.bf16.msra.mxu0 %v1253_v54  ;;  %709 = vmatpush1.bf16.msra.mxu1 %v1331_v9  ;;  %v1370_v54 = vld [vmem:[%s1790_s3 + $0x68] sm:$0xff]  }
  0x40   :  { %766 = vmatprep.subr.bf16.mxu0 %v1262_v56  ;;  %710 = vmatprep.subr.bf16.mxu1 %v1335_v10  ;;  %v1372_v56 = vld [vmem:[%s1790_s3 + $0x70] sm:$0xff]  }
  0x42   :  { %756 = vmatmul.mubr.bf16.vlgmr.msra.gmra.mrb[0].mxu0 %v1257_v57  ;;  %v1373_v57 = vld [vmem:[%s1790_s3 + $0x30] sm:$0xff]  }
  0x43   :  { %767 = vmatpush1.bf16.msra.mxu0 %v1260_v58  ;;  %798 = vmatprep.mubr.bf16.mxu0 %v1358_v5  ;;  %v1374_v58 = vld [vmem:[%s1790_s3 + $0x78] sm:$0xff]   ;;  %v132_v5 = vshrl.u32 %v131_v4, 7 }
  0x44   :  { %768 = vmatprep.subr.bf16.mxu0 %v1268_v62  ;;  %711 = vmatpush1.bf16.msra.mxu1 %v1337_v13 }
  0x45   :  { %809 = vmatprep.subr.bf16.mxu1 %v1346_v14  ;;  %v133_v6 = vsub.s32 0, %v132_v5 }
  0x47   :  { %769 = vmatpush1.bf16.msra.mxu0 %v1266_v0  ;;  %713 = vmatmul.mubr.bf16.vlgmr.msra.gmra.mrb[0].mxu1 %v1341_v16 }
  0x48   :  { %770 = vmatprep.subr.bf16.mxu0 %v1274_v2  ;;  %810 = vmatpush1.bf16.msra.mxu1 %v1344_v17 }
  0x49   :  { %841 = vmatprep.mubr.bf16.mxu1 %v1376_v22  ;;  %811 = vmatprep.subr.bf16.mxu1 %v1352_v19 }
  0x4b   :  { %771 = vmatpush1.bf16.msra.mxu0 %v1272_v3 }
  0x4c   :  { %772 = vmatprep.subr.bf16.mxu0 %v1280_v7  ;;  %812 = vmatpush1.bf16.msra.mxu1 %v1350_v21  ;;  %v129_v7 = vld [vmem:[%s1791_s2] sm:$0x3] }
  0x4d   :  { %1161 = vmatprep.subr.bf16.mxu1 %v1360_v24  ;;  %v134_v9 = vrot.slane %v129_v7, %v133_v6 }
  0x4f   :  { %773 = vmatpush1.bf16.msra.mxu0 %v1278_v8  ;;  %1143 = vmatmul.mubr.msk.bf16.vlgmr.msra.gmra.mrb[4].mxu1 %vm676_vm0, %v1359_v26  ;;  %v137_v8 = vsub.s32 1, %v132_v5 }
  0x50   :  { %774 = vmatprep.subr.bf16.mxu0 %v1286_v11  ;;  %1162 = vmatpush3.bf16.msra.mxu1 %v1361_v27 }
  0x51   :  { %1163 = vmatprep.subr.bf16.mxu1 %v1362_v29  ;;  %v138_v10 = vrot.slane %v129_v7, %v137_v8 }
  0x53   :  { %775 = vmatpush1.bf16.msra.mxu0 %v1284_v12 }
  0x54   :  { %776 = vmatprep.subr.bf16.mxu0 %v1292_v15  ;;  %1164 = vmatpush3.bf16.msra.mxu1 %v1363_v31 }
  0x55   :  { %1165 = vmatprep.subr.bf16.mxu1 %v1364_v33 }
  0x57   :  { %777 = vmatpush1.bf16.msra.mxu0 %v1290_v18 }
  0x58   :  { %778 = vmatprep.subr.bf16.mxu0 %v1298_v20  ;;  %1166 = vmatpush3.bf16.msra.mxu1 %v1365_v35 }
  0x59   :  { %1167 = vmatprep.subr.bf16.mxu1 %v1366_v50 }
  0x5b   :  { %779 = vmatpush1.bf16.msra.mxu0 %v1296_v23 }
  0x5c   :  { %780 = vmatprep.subr.bf16.mxu0 %v1304_v25  ;;  %1168 = vmatpush3.bf16.msra.mxu1 %v1367_v51 }
  0x5d   :  { %1169 = vmatprep.subr.bf16.mxu1 %v1368_v52 }
  0x5f   :  { %781 = vmatpush1.bf16.msra.mxu0 %v1302_v28 }
  0x60   :  { %782 = vmatprep.subr.bf16.mxu0 %v1310_v30  ;;  %1170 = vmatpush3.bf16.msra.mxu1 %v1369_v53  ;;  %v1144_v30 = vld [vmem:[%s1792_s4] ss:$0 sm:$0xff] }
  0x61   :  { %1171 = vmatprep.subr.bf16.mxu1 %v1370_v54 }
  0x63   :  { %783 = vmatpush1.bf16.msra.mxu0 %v1308_v32 }
  0x64   :  { %784 = vmatprep.subr.bf16.mxu0 %v1316_v34  ;;  %1172 = vmatpush3.bf16.msra.mxu1 %v1371_v55 }
  0x65   :  { %1173 = vmatprep.subr.bf16.mxu1 %v1372_v56 }
  0x67   :  { %785 = vmatpush1.bf16.msra.mxu0 %v1314_v36 }
  0x68   :  { %786 = vmatprep.subr.bf16.mxu0 %v1322_v37  ;;  %1174 = vmatpush3.bf16.msra.mxu1 %v1373_v57 }
  0x69   :  { %1175 = vmatprep.subr.bf16.mxu1 %v1374_v58 }
  0x6b   :  { %787 = vmatpush1.bf16.msra.mxu0 %v1320_v38 }
  0x6c   :  { %788 = vmatprep.subr.bf16.mxu0 %v1328_v39  ;;  %1176 = vmatpush3.bf16.msra.mxu1 %v1375_v59 }
  0x6f   :  { %789 = vmatpush1.bf16.msra.mxu0 %v1326_v40 }
  0x70   :  { %790 = vmatprep.subr.bf16.mxu0 %v1334_v41 }
  0x73   :  { %791 = vmatpush1.bf16.msra.mxu0 %v1332_v42 }
  0x74   :  { %792 = vmatprep.subr.bf16.mxu0 %v1340_v43 }
  0x77   :  { %793 = vmatpush1.bf16.msra.mxu0 %v1338_v44 }
  0x78   :  { %794 = vmatprep.subr.bf16.mxu0 %v1349_v45 }
  0x7b   :  { %795 = vmatpush1.bf16.msra.mxu0 %v1347_v46 }
  0x7c   :  { %796 = vmatprep.subr.bf16.mxu0 %v1355_v47 }
  0x7f   :  { %797 = vmatpush1.bf16.msra.mxu0 %v1353_v48 }
  0x82   :  { %799 = vmatmul.mubr.bf16.vlgmr.msra.gmra.mrb[0].mxu0 %v1356_v49 }
 0x11a   :  { %v714_v60 = vpop.f32.mrb[0].mxu1 }
 0x11b   :  { %v716_v61 = vpop.f32.mrb[1].mxu1  ;;  %v715_v11 = vadd.f32 %v714_v60, %v134_v9 }
 0x11c   :  { %v718_v62 = vpop.f32.mrb[2].mxu1  ;;  %v717_v12 = vadd.f32 %v716_v61, %v138_v10 }
 0x11d   :  { %v720_v63 = vpop.f32.mrb[3].mxu1  ;;  %v719_v14 = vadd.f32 %v718_v62, %v134_v9 }
 0x11e   :  { %v721_v17 = vadd.f32 %v720_v63, %v138_v10 }
 0x122   :  { %v843_v0 = vpop.f32.mrb[4].mxu1 }
 0x123   :  { %v845_v1 = vpop.f32.mrb[5].mxu1 }
 0x124   :  { %v847_v2 = vpop.f32.mrb[6].mxu1 }
 0x125   :  { %v849_v3 = vpop.f32.mrb[7].mxu1 }
 0x155   :  { %v800_v13 = vpop.f32.mrb[0].mxu0 }
 0x156   :  { %v1184_v15 = vadd.f32 %v800_v13, %v715_v11  ;;  %v802_v16 = vpop.f32.mrb[1].mxu0 }
 0x157   :  { %v1187_v18 = vadd.f32 %v802_v16, %v717_v12  ;;  %v804_v19 = vpop.f32.mrb[2].mxu0 }
 0x158   :  { %v1185_v20 = vadd.f32 %v1184_v15, %v843_v0  ;;  %v1190_v21 = vadd.f32 %v804_v19, %v719_v14  ;;  %v806_v22 = vpop.f32.mrb[3].mxu0 }
 0x159   :  { %v1188_v23 = vadd.f32 %v1187_v18, %v845_v1  ;;  %v1193_v24 = vadd.f32 %v806_v22, %v721_v17 }
 0x15a   :  { %v1191_v25 = vadd.f32 %v1190_v21, %v847_v2 }
 0x15b   :  { %v1194_v26 = vadd.f32 %v1193_v24, %v849_v3 }
 0x15c   :  { %v852_v27 = vpack.c.bf16 %v1191_v25, %v1185_v20 }
 0x15d   :  { %v853_v28 = vpack.c.bf16 %v1194_v26, %v1188_v23 }
 0x15f   :  { %1021 = vmatprep.mubr.bf16.mxu1 %v853_v28 }
 0x160   :  { %1022 = vmatmul.mubr.bf16.vlgmr.msra.gmra.mrb[8].mxu1 %v852_v27 }
 0x233   :  { %v1177_v29 = vpop.f32.mrb[8].mxu1 }
 0x234   :  { %v1178_v31 = vpop.f32.mrb[9].mxu1 }
 0x235   :  { %v1179_v32 = vadd.f32 %v1178_v31, %v1177_v29  ;;  %v1180_v33 = vpop.f32.mrb[10].mxu1 }
 0x236   :  { %v1181_v34 = vpop.f32.mrb[11].mxu1 }
 0x237   :  { %v1024_v35 = vadd.f32 %v1179_v32, %v1144_v30  ;;  %v1182_v36 = vadd.f32 %v1181_v34, %v1180_v33 }
 0x239   :  { %1030 = vst [vmem:[%s1793_s5] sm:$0xff] %v1024_v35  ;;  %v1027_v37 = vadd.f32 %v1182_v36, %v1144_v30 }
 0x23b   :  { %1031 = vst [vmem:[%s1793_s5 + $0x8] sm:$0xff] %v1027_v37 }

</bundles_post_ra>
